<compile_context>
chip_gen: v7x
topology: tpu7x:2x2x1
jax: 0.10.0
libtpu: 0.0.40
codegen_flags: <defaults>
</compile_context>

<pallas_src>
import math
import jax
import jax.numpy as jnp
from jax.experimental import pallas as pl
from jax.experimental.pallas import tpu as pltpu

# ---- model hyper-parameters (small, consistent with a generic EncoderLayer) ----
N_LAYERS = 2
D_MODEL  = 32
N_HEADS  = 4
D_K      = D_MODEL // N_HEADS
D_FF     = 64
LN_EPS   = 1e-5

# row layout of the packed "vecs" array: per layer [ln_g_attn, ln_b_attn, bo, ln_g_ffn, ln_b_ffn, b2],
# then [final_gamma, final_beta]
VEC_ROWS = 6 * N_LAYERS + 2


def _layer_norm(v, gamma, beta):
    # nn.LayerNorm semantics: biased variance over the last dim, eps inside rsqrt.
    mu  = jnp.mean(v, axis=-1, keepdims=True)
    var = jnp.mean((v - mu) ** 2, axis=-1, keepdims=True)
    return (v - mu) * jax.lax.rsqrt(var + LN_EPS) * gamma + beta


def encoder_kernel(x_ref, mask_ref,
                   wqkv_ref, bqkv_ref, wo_ref,
                   w1_ref, b1_ref, w2_ref,
                   vecs_ref, o_ref):
    # x_ref:    (B*S, D)        all batch rows fused
    # mask_ref: (B*S, B*S)      additive mask: 0 where same-batch & unmasked key, -1e9 otherwise
    # wqkv:     (L, D, 3D)      [Wq*scale | Wk | Wv] per layer (head h = cols h*D_K of each block)
    # bqkv:     (L, 3D)         [bq*scale | bk | bv]
    # wo:       (L*H, D_K, D)   per-head output projections
    # w1:       (L, D, D_FF); b1: (L, D_FF); w2: (L, D_FF, D)
    # vecs:     (6L+2, D)       packed LN params / output biases / final LN
    x = x_ref[...].astype(jnp.float32)          # (N, D), N = B*S
    neg = mask_ref[...]                         # (N, N)
    vecs = vecs_ref[...]                        # (6L+2, D)

    for l in range(N_LAYERS):
        base = 6 * l

        # ---------- self-attention sublayer (pre-norm residual) ----------
        y = _layer_norm(x, vecs[base + 0:base + 1], vecs[base + 1:base + 2])
        # single fused QKV matmul for all heads (scale already folded into Q columns)
        qkv = jnp.dot(y, wqkv_ref[l], preferred_element_type=jnp.float32) \
              + bqkv_ref[l:l + 1]                                          # (N, 3D)
        attn = None
        for h in range(N_HEADS):
            qh = qkv[:, h * D_K:(h + 1) * D_K]                             # (N, D_K)
            kh = qkv[:, D_MODEL + h * D_K:D_MODEL + (h + 1) * D_K]
            vh = qkv[:, 2 * D_MODEL + h * D_K:2 * D_MODEL + (h + 1) * D_K]
            s = jax.lax.dot_general(qh, kh, (((1,), (1,)), ((), ())),
                                    preferred_element_type=jnp.float32) + neg   # (N, N)
            # stable softmax; reciprocal goes to the (otherwise idle) EUP slot
            m = jnp.max(s, axis=-1, keepdims=True)
            e = jnp.exp(s - m)
            p = e * pl.reciprocal(jnp.sum(e, axis=-1, keepdims=True), approx=True)
            oh = jnp.dot(p, vh, preferred_element_type=jnp.float32)             # (N, D_K)
            contrib = jnp.dot(oh, wo_ref[l * N_HEADS + h],
                              preferred_element_type=jnp.float32)               # (N, D)
            attn = contrib if attn is None else attn + contrib
        x = x + attn + vecs[base + 2:base + 3]        # + bo; dropout is identity (eval mode)

        # ---------- position-wise feed-forward sublayer ----------
        y = _layer_norm(x, vecs[base + 3:base + 4], vecs[base + 4:base + 5])
        hdd = jnp.maximum(jnp.dot(y, w1_ref[l], preferred_element_type=jnp.float32)
                          + b1_ref[l:l + 1], 0.0)
        x = x + jnp.dot(hdd, w2_ref[l], preferred_element_type=jnp.float32) \
              + vecs[base + 5:base + 6]

    # ---------- final encoder LayerNorm ----------
    fbase = 6 * N_LAYERS
    o_ref[...] = _layer_norm(x, vecs[fbase:fbase + 1],
                             vecs[fbase + 1:fbase + 2]).astype(o_ref.dtype)


def init_params(key):
    ks = jax.random.split(key, 16)
    s = 0.1
    nrm = jax.random.normal
    p = {
        "wq": s * nrm(ks[0], (N_LAYERS, D_MODEL, D_MODEL), jnp.float32),
        "wk": s * nrm(ks[1], (N_LAYERS, D_MODEL, D_MODEL), jnp.float32),
        "wv": s * nrm(ks[2], (N_LAYERS, D_MODEL, D_MODEL), jnp.float32),
        "wo": s * nrm(ks[3], (N_LAYERS, D_MODEL, D_MODEL), jnp.float32),
        "bq": s * nrm(ks[4], (N_LAYERS, D_MODEL), jnp.float32),
        "bk": s * nrm(ks[5], (N_LAYERS, D_MODEL), jnp.float32),
        "bv": s * nrm(ks[6], (N_LAYERS, D_MODEL), jnp.float32),
        "bo": s * nrm(ks[7], (N_LAYERS, D_MODEL), jnp.float32),
        "w1": s * nrm(ks[8], (N_LAYERS, D_MODEL, D_FF), jnp.float32),
        "b1": s * nrm(ks[9], (N_LAYERS, D_FF), jnp.float32),
        "w2": s * nrm(ks[10], (N_LAYERS, D_FF, D_MODEL), jnp.float32),
        "b2": s * nrm(ks[11], (N_LAYERS, D_MODEL), jnp.float32),
        "ln_g": 1.0 + s * nrm(ks[12], (N_LAYERS, 2, D_MODEL), jnp.float32),
        "ln_b": s * nrm(ks[13], (N_LAYERS, 2, D_MODEL), jnp.float32),
        "fg": 1.0 + s * nrm(ks[14], (1, D_MODEL), jnp.float32),
        "fb": s * nrm(ks[15], (1, D_MODEL), jnp.float32),
    }
    return p


def encoder_forward(x, x_mask, params):
    """x: (B, S, D) float32, x_mask: (B, 1, S) float32 (0 = masked key position)."""
    B, S, D = x.shape
    N = B * S
    scale = 1.0 / math.sqrt(D_K)

    # ---- wrapper-side layout prep (fused QKV, scale folding, packed row vectors) ----
    wqkv = jnp.concatenate([params["wq"] * scale, params["wk"], params["wv"]],
                           axis=-1)                                   # (L, D, 3D)
    bqkv = jnp.concatenate([params["bq"] * scale, params["bk"], params["bv"]],
                           axis=-1)                                   # (L, 3D)
    # wo rows [h*D_K, (h+1)*D_K) correspond to head h of the concatenated attention output
    wo = params["wo"].reshape(N_LAYERS * N_HEADS, D_K, D_MODEL)
    w1, b1, w2 = params["w1"], params["b1"], params["w2"]

    rows = []
    for l in range(N_LAYERS):
        rows += [params["ln_g"][l, 0], params["ln_b"][l, 0], params["bo"][l],
                 params["ln_g"][l, 1], params["ln_b"][l, 1], params["b2"][l]]
    rows += [params["fg"][0], params["fb"][0]]
    vecs = jnp.stack(rows, axis=0).astype(jnp.float32)                # (6L+2, D)

    # ---- fuse the batch: (B, S, D) -> (B*S, D); hoist the attention mask out of the kernel ----
    x2 = x.reshape(N, D)
    bidx = jnp.arange(N) // S
    same_batch = bidx[:, None] == bidx[None, :]
    key_ok = (x_mask.reshape(N) != 0.0)
    add_mask = jnp.where(same_batch & key_ok[None, :], 0.0, -1e9).astype(jnp.float32)

    weights = [wqkv, bqkv, wo, w1, b1, w2, vecs]

    def full_spec(a):
        nd = a.ndim
        return pl.BlockSpec(a.shape, lambda i, _nd=nd: (0,) * _nd)

    out2 = pl.pallas_call(
        encoder_kernel,
        out_shape=jax.ShapeDtypeStruct((N, D), x.dtype),
        grid=(1,),
        in_specs=[full_spec(x2), full_spec(add_mask)] + [full_spec(w) for w in weights],
        out_specs=pl.BlockSpec((N, D), lambda i: (0, 0)),
        compiler_params=pltpu.CompilerParams(dimension_semantics=("arbitrary",)),
    )(x2, add_mask, *weights)
    return out2.reshape(B, S, D)


# ---------------- pure-JAX reference for a sanity check ----------------
def encoder_reference(x, x_mask, p):
    def ln(v, g, b):
        mu = jnp.mean(v, -1, keepdims=True)
        var = jnp.mean((v - mu) ** 2, -1, keepdims=True)
        return (v - mu) / jnp.sqrt(var + LN_EPS) * g + b

    neg = jnp.where(x_mask == 0.0, -1e9, 0.0)[:, None, :, :]   # (B,1,1,S)
    for l in range(N_LAYERS):
        y = ln(x, p["ln_g"][l, 0], p["ln_b"][l, 0])
        q = y @ p["wq"][l] + p["bq"][l]
        k = y @ p["wk"][l] + p["bk"][l]
        v = y @ p["wv"][l] + p["bv"][l]
        B, S, _ = q.shape
        qh = q.reshape(B, S, N_HEADS, D_K).transpose(0, 2, 1, 3)
        kh = k.reshape(B, S, N_HEADS, D_K).transpose(0, 2, 1, 3)
        vh = v.reshape(B, S, N_HEADS, D_K).transpose(0, 2, 1, 3)
        sc = jnp.einsum("bhqd,bhkd->bhqk", qh, kh) / math.sqrt(D_K) + neg
        a = jax.nn.softmax(sc, -1)
        o = jnp.einsum("bhqk,bhkd->bhqd", a, vh).transpose(0, 2, 1, 3).reshape(B, S, D_MODEL)
        x = x + (o @ p["wo"][l] + p["bo"][l])
        y = ln(x, p["ln_g"][l, 1], p["ln_b"][l, 1])
        x = x + (jnp.maximum(y @ p["w1"][l] + p["b1"][l], 0.0) @ p["w2"][l] + p["b2"][l])
    return ln(x, p["fg"], p["fb"])


if __name__ == "__main__":
    B, S = 2, 8
    key = jax.random.PRNGKey(0)
    k_x, k_p = jax.random.split(key)

    x = jax.random.normal(k_x, (B, S, D_MODEL), jnp.float32)
    x_mask = jnp.ones((B, 1, S), jnp.float32)
    x_mask = x_mask.at[1, 0, -2:].set(0.0)        # mask out last two key positions of batch 1

    params = init_params(k_p)

    out = encoder_forward(x, x_mask, params)
    out = jax.block_until_ready(out)

    ref = encoder_reference(x, x_mask, params)
    assert out.shape == (B, S, D_MODEL)
    assert jnp.allclose(out, ref, atol=1e-2, rtol=1e-2)

    print("KERNEL_OK")
</pallas_src>

<mosaic_0001>
module attributes {stable_mosaic.version = 11 : i64} {
  func.func @encoder_kernel(%arg0: i32, %arg1: memref<16x32xf32, #tpu.memory_space<vmem>>, %arg2: memref<16x16xf32, #tpu.memory_space<vmem>>, %arg3: memref<2x32x96xf32, #tpu.memory_space<vmem>>, %arg4: memref<2x96xf32, #tpu.memory_space<vmem>>, %arg5: memref<8x8x32xf32, #tpu.memory_space<vmem>>, %arg6: memref<2x32x64xf32, #tpu.memory_space<vmem>>, %arg7: memref<2x64xf32, #tpu.memory_space<vmem>>, %arg8: memref<2x64x32xf32, #tpu.memory_space<vmem>>, %arg9: memref<14x32xf32, #tpu.memory_space<vmem>>, %arg10: memref<16x32xf32, #tpu.memory_space<vmem>>) attributes {dimension_semantics = [#tpu.dimension_semantics<arbitrary>], iteration_bounds = array<i64: 1>, scalar_prefetch = 0 : i64, scratch_operands = 0 : i64, tpu.core_type = #tpu.core_type<tc>, window_params = [{pipeline_mode = #tpu.pipeline_mode<synchronous>, transform_indices = @transform_0, window_bounds = array<i64: 16, 32>}, {pipeline_mode = #tpu.pipeline_mode<synchronous>, transform_indices = @transform_1, window_bounds = array<i64: 16, 16>}, {pipeline_mode = #tpu.pipeline_mode<synchronous>, transform_indices = @transform_2, window_bounds = array<i64: 2, 32, 96>}, {pipeline_mode = #tpu.pipeline_mode<synchronous>, transform_indices = @transform_3, window_bounds = array<i64: 2, 96>}, {pipeline_mode = #tpu.pipeline_mode<synchronous>, transform_indices = @transform_4, window_bounds = array<i64: 8, 8, 32>}, {pipeline_mode = #tpu.pipeline_mode<synchronous>, transform_indices = @transform_5, window_bounds = array<i64: 2, 32, 64>}, {pipeline_mode = #tpu.pipeline_mode<synchronous>, transform_indices = @transform_6, window_bounds = array<i64: 2, 64>}, {pipeline_mode = #tpu.pipeline_mode<synchronous>, transform_indices = @transform_7, window_bounds = array<i64: 2, 64, 32>}, {pipeline_mode = #tpu.pipeline_mode<synchronous>, transform_indices = @transform_8, window_bounds = array<i64: 14, 32>}, {pipeline_mode = #tpu.pipeline_mode<synchronous>, transform_indices = @transform_9, window_bounds = array<i64: 16, 32>}]} {
    %c0 = arith.constant 0 : index
    %c0_0 = arith.constant 0 : index
    %0 = vector.load %arg1[%c0, %c0_0] : memref<16x32xf32, #tpu.memory_space<vmem>>, vector<16x32xf32>
    %c0_1 = arith.constant 0 : index
    %c0_2 = arith.constant 0 : index
    %1 = vector.load %arg2[%c0_1, %c0_2] : memref<16x16xf32, #tpu.memory_space<vmem>>, vector<16x16xf32>
    %c0_3 = arith.constant 0 : index
    %c0_4 = arith.constant 0 : index
    %2 = vector.load %arg9[%c0_3, %c0_4] : memref<14x32xf32, #tpu.memory_space<vmem>>, vector<14x32xf32>
    %3 = vector.extract_strided_slice %2 {offsets = [0, 0], sizes = [1, 32], strides = [1, 1]} : vector<14x32xf32> to vector<1x32xf32>
    %4 = vector.extract_strided_slice %2 {offsets = [1, 0], sizes = [1, 32], strides = [1, 1]} : vector<14x32xf32> to vector<1x32xf32>
    %cst = arith.constant dense<0.000000e+00> : vector<16xf32>
    %5 = vector.multi_reduction <add>, %0, %cst [1] : vector<16x32xf32> to vector<16xf32>
    %6 = vector.shape_cast %5 : vector<16xf32> to vector<16x1xf32>
    %cst_5 = arith.constant 3.200000e+01 : f32
    %7 = vector.broadcast %cst_5 : f32 to vector<16x1xf32>
    %8 = arith.divf %6, %7 : vector<16x1xf32>
    %9 = vector.broadcast %8 : vector<16x1xf32> to vector<16x32xf32>
    %10 = arith.subf %0, %9 : vector<16x32xf32>
    %11 = arith.mulf %10, %10 : vector<16x32xf32>
    %cst_6 = arith.constant dense<0.000000e+00> : vector<16xf32>
    %12 = vector.multi_reduction <add>, %11, %cst_6 [1] : vector<16x32xf32> to vector<16xf32>
    %13 = vector.shape_cast %12 : vector<16xf32> to vector<16x1xf32>
    %cst_7 = arith.constant 3.200000e+01 : f32
    %14 = vector.broadcast %cst_7 : f32 to vector<16x1xf32>
    %15 = arith.divf %13, %14 : vector<16x1xf32>
    %16 = vector.broadcast %8 : vector<16x1xf32> to vector<16x32xf32>
    %17 = arith.subf %0, %16 : vector<16x32xf32>
    %cst_8 = arith.constant 9.99999974E-6 : f32
    %18 = vector.broadcast %cst_8 : f32 to vector<16x1xf32>
    %19 = arith.addf %15, %18 : vector<16x1xf32>
    %20 = math.rsqrt %19 : vector<16x1xf32>
    %21 = vector.broadcast %20 : vector<16x1xf32> to vector<16x32xf32>
    %22 = arith.mulf %17, %21 : vector<16x32xf32>
    %23 = vector.broadcast %3 : vector<1x32xf32> to vector<16x32xf32>
    %24 = arith.mulf %22, %23 : vector<16x32xf32>
    %25 = vector.broadcast %4 : vector<1x32xf32> to vector<16x32xf32>
    %26 = arith.addf %24, %25 : vector<16x32xf32>
    %c0_9 = arith.constant 0 : index
    %c0_10 = arith.constant 0 : index
    %c0_11 = arith.constant 0 : index
    %27 = vector.load %arg3[%c0_9, %c0_10, %c0_11] : memref<2x32x96xf32, #tpu.memory_space<vmem>>, vector<1x32x96xf32>
    %28 = vector.shape_cast %27 : vector<1x32x96xf32> to vector<32x96xf32>
    %cst_12 = arith.constant dense<0.000000e+00> : vector<16x96xf32>
    %29 = tpu.matmul %26, %28, %cst_12 {dimension_numbers = #tpu.dot_dimension_numbers<[1], [0], [0], [1], [0, 0, 1, 1], [], []>} : vector<16x32xf32>, vector<32x96xf32>, vector<16x96xf32> -> vector<16x96xf32>
    %c0_13 = arith.constant 0 : index
    %c0_14 = arith.constant 0 : index
    %30 = vector.load %arg4[%c0_13, %c0_14] : memref<2x96xf32, #tpu.memory_space<vmem>>, vector<1x96xf32>
    %31 = vector.broadcast %30 : vector<1x96xf32> to vector<16x96xf32>
    %32 = arith.addf %29, %31 : vector<16x96xf32>
    %33 = vector.extract_strided_slice %32 {offsets = [0, 0], sizes = [16, 8], strides = [1, 1]} : vector<16x96xf32> to vector<16x8xf32>
    %34 = vector.extract_strided_slice %32 {offsets = [0, 32], sizes = [16, 8], strides = [1, 1]} : vector<16x96xf32> to vector<16x8xf32>
    %35 = vector.extract_strided_slice %32 {offsets = [0, 64], sizes = [16, 8], strides = [1, 1]} : vector<16x96xf32> to vector<16x8xf32>
    %cst_15 = arith.constant dense<0.000000e+00> : vector<16x16xf32>
    %36 = tpu.matmul %33, %34, %cst_15 {dimension_numbers = #tpu.dot_dimension_numbers<[1], [1], [0], [0], [0, 0, 1, 0], [], []>} : vector<16x8xf32>, vector<16x8xf32>, vector<16x16xf32> -> vector<16x16xf32>
    %37 = arith.addf %36, %1 : vector<16x16xf32>
    %cst_16 = arith.constant dense<0xFF800000> : vector<16xf32>
    %38 = vector.multi_reduction <maximumf>, %37, %cst_16 [1] : vector<16x16xf32> to vector<16xf32>
    %39 = vector.shape_cast %38 : vector<16xf32> to vector<16x1xf32>
    %40 = vector.broadcast %39 : vector<16x1xf32> to vector<16x16xf32>
    %41 = arith.subf %37, %40 : vector<16x16xf32>
    %42 = math.exp %41 : vector<16x16xf32>
    %cst_17 = arith.constant dense<0.000000e+00> : vector<16xf32>
    %43 = vector.multi_reduction <add>, %42, %cst_17 [1] : vector<16x16xf32> to vector<16xf32>
    %44 = vector.shape_cast %43 : vector<16xf32> to vector<16x1xf32>
    %45 = tpu.reciprocal %44 {approx = true} : vector<16x1xf32> -> vector<16x1xf32>
    %46 = vector.broadcast %45 : vector<16x1xf32> to vector<16x16xf32>
    %47 = arith.mulf %42, %46 : vector<16x16xf32>
    %cst_18 = arith.constant dense<0.000000e+00> : vector<16x8xf32>
    %48 = tpu.matmul %47, %35, %cst_18 {dimension_numbers = #tpu.dot_dimension_numbers<[1], [0], [0], [1], [0, 0, 1, 1], [], []>} : vector<16x16xf32>, vector<16x8xf32>, vector<16x8xf32> -> vector<16x8xf32>
    %c0_19 = arith.constant 0 : index
    %c0_20 = arith.constant 0 : index
    %c0_21 = arith.constant 0 : index
    %49 = vector.load %arg5[%c0_19, %c0_20, %c0_21] : memref<8x8x32xf32, #tpu.memory_space<vmem>>, vector<1x8x32xf32>
    %50 = vector.shape_cast %49 : vector<1x8x32xf32> to vector<8x32xf32>
    %cst_22 = arith.constant dense<0.000000e+00> : vector<16x32xf32>
    %51 = tpu.matmul %48, %50, %cst_22 {dimension_numbers = #tpu.dot_dimension_numbers<[1], [0], [0], [1], [0, 0, 1, 1], [], []>} : vector<16x8xf32>, vector<8x32xf32>, vector<16x32xf32> -> vector<16x32xf32>
    %52 = vector.extract_strided_slice %32 {offsets = [0, 8], sizes = [16, 8], strides = [1, 1]} : vector<16x96xf32> to vector<16x8xf32>
    %53 = vector.extract_strided_slice %32 {offsets = [0, 40], sizes = [16, 8], strides = [1, 1]} : vector<16x96xf32> to vector<16x8xf32>
    %54 = vector.extract_strided_slice %32 {offsets = [0, 72], sizes = [16, 8], strides = [1, 1]} : vector<16x96xf32> to vector<16x8xf32>
    %cst_23 = arith.constant dense<0.000000e+00> : vector<16x16xf32>
    %55 = tpu.matmul %52, %53, %cst_23 {dimension_numbers = #tpu.dot_dimension_numbers<[1], [1], [0], [0], [0, 0, 1, 0], [], []>} : vector<16x8xf32>, vector<16x8xf32>, vector<16x16xf32> -> vector<16x16xf32>
    %56 = arith.addf %55, %1 : vector<16x16xf32>
    %cst_24 = arith.constant dense<0xFF800000> : vector<16xf32>
    %57 = vector.multi_reduction <maximumf>, %56, %cst_24 [1] : vector<16x16xf32> to vector<16xf32>
    %58 = vector.shape_cast %57 : vector<16xf32> to vector<16x1xf32>
    %59 = vector.broadcast %58 : vector<16x1xf32> to vector<16x16xf32>
    %60 = arith.subf %56, %59 : vector<16x16xf32>
    %61 = math.exp %60 : vector<16x16xf32>
    %cst_25 = arith.constant dense<0.000000e+00> : vector<16xf32>
    %62 = vector.multi_reduction <add>, %61, %cst_25 [1] : vector<16x16xf32> to vector<16xf32>
    %63 = vector.shape_cast %62 : vector<16xf32> to vector<16x1xf32>
    %64 = tpu.reciprocal %63 {approx = true} : vector<16x1xf32> -> vector<16x1xf32>
    %65 = vector.broadcast %64 : vector<16x1xf32> to vector<16x16xf32>
    %66 = arith.mulf %61, %65 : vector<16x16xf32>
    %cst_26 = arith.constant dense<0.000000e+00> : vector<16x8xf32>
    %67 = tpu.matmul %66, %54, %cst_26 {dimension_numbers = #tpu.dot_dimension_numbers<[1], [0], [0], [1], [0, 0, 1, 1], [], []>} : vector<16x16xf32>, vector<16x8xf32>, vector<16x8xf32> -> vector<16x8xf32>
    %c1 = arith.constant 1 : index
    %c0_27 = arith.constant 0 : index
    %c0_28 = arith.constant 0 : index
    %68 = vector.load %arg5[%c1, %c0_27, %c0_28] : memref<8x8x32xf32, #tpu.memory_space<vmem>>, vector<1x8x32xf32>
    %69 = vector.shape_cast %68 : vector<1x8x32xf32> to vector<8x32xf32>
    %cst_29 = arith.constant dense<0.000000e+00> : vector<16x32xf32>
    %70 = tpu.matmul %67, %69, %cst_29 {dimension_numbers = #tpu.dot_dimension_numbers<[1], [0], [0], [1], [0, 0, 1, 1], [], []>} : vector<16x8xf32>, vector<8x32xf32>, vector<16x32xf32> -> vector<16x32xf32>
    %71 = arith.addf %51, %70 : vector<16x32xf32>
    %72 = vector.extract_strided_slice %32 {offsets = [0, 16], sizes = [16, 8], strides = [1, 1]} : vector<16x96xf32> to vector<16x8xf32>
    %73 = vector.extract_strided_slice %32 {offsets = [0, 48], sizes = [16, 8], strides = [1, 1]} : vector<16x96xf32> to vector<16x8xf32>
    %74 = vector.extract_strided_slice %32 {offsets = [0, 80], sizes = [16, 8], strides = [1, 1]} : vector<16x96xf32> to vector<16x8xf32>
    %cst_30 = arith.constant dense<0.000000e+00> : vector<16x16xf32>
    %75 = tpu.matmul %72, %73, %cst_30 {dimension_numbers = #tpu.dot_dimension_numbers<[1], [1], [0], [0], [0, 0, 1, 0], [], []>} : vector<16x8xf32>, vector<16x8xf32>, vector<16x16xf32> -> vector<16x16xf32>
    %76 = arith.addf %75, %1 : vector<16x16xf32>
    %cst_31 = arith.constant dense<0xFF800000> : vector<16xf32>
    %77 = vector.multi_reduction <maximumf>, %76, %cst_31 [1] : vector<16x16xf32> to vector<16xf32>
    %78 = vector.shape_cast %77 : vector<16xf32> to vector<16x1xf32>
    %79 = vector.broadcast %78 : vector<16x1xf32> to vector<16x16xf32>
    %80 = arith.subf %76, %79 : vector<16x16xf32>
    %81 = math.exp %80 : vector<16x16xf32>
    %cst_32 = arith.constant dense<0.000000e+00> : vector<16xf32>
    %82 = vector.multi_reduction <add>, %81, %cst_32 [1] : vector<16x16xf32> to vector<16xf32>
    %83 = vector.shape_cast %82 : vector<16xf32> to vector<16x1xf32>
    %84 = tpu.reciprocal %83 {approx = true} : vector<16x1xf32> -> vector<16x1xf32>
    %85 = vector.broadcast %84 : vector<16x1xf32> to vector<16x16xf32>
    %86 = arith.mulf %81, %85 : vector<16x16xf32>
    %cst_33 = arith.constant dense<0.000000e+00> : vector<16x8xf32>
    %87 = tpu.matmul %86, %74, %cst_33 {dimension_numbers = #tpu.dot_dimension_numbers<[1], [0], [0], [1], [0, 0, 1, 1], [], []>} : vector<16x16xf32>, vector<16x8xf32>, vector<16x8xf32> -> vector<16x8xf32>
    %c2 = arith.constant 2 : index
    %c0_34 = arith.constant 0 : index
    %c0_35 = arith.constant 0 : index
    %88 = vector.load %arg5[%c2, %c0_34, %c0_35] : memref<8x8x32xf32, #tpu.memory_space<vmem>>, vector<1x8x32xf32>
    %89 = vector.shape_cast %88 : vector<1x8x32xf32> to vector<8x32xf32>
    %cst_36 = arith.constant dense<0.000000e+00> : vector<16x32xf32>
    %90 = tpu.matmul %87, %89, %cst_36 {dimension_numbers = #tpu.dot_dimension_numbers<[1], [0], [0], [1], [0, 0, 1, 1], [], []>} : vector<16x8xf32>, vector<8x32xf32>, vector<16x32xf32> -> vector<16x32xf32>
    %91 = arith.addf %71, %90 : vector<16x32xf32>
    %92 = vector.extract_strided_slice %32 {offsets = [0, 24], sizes = [16, 8], strides = [1, 1]} : vector<16x96xf32> to vector<16x8xf32>
    %93 = vector.extract_strided_slice %32 {offsets = [0, 56], sizes = [16, 8], strides = [1, 1]} : vector<16x96xf32> to vector<16x8xf32>
    %94 = vector.extract_strided_slice %32 {offsets = [0, 88], sizes = [16, 8], strides = [1, 1]} : vector<16x96xf32> to vector<16x8xf32>
    %cst_37 = arith.constant dense<0.000000e+00> : vector<16x16xf32>
    %95 = tpu.matmul %92, %93, %cst_37 {dimension_numbers = #tpu.dot_dimension_numbers<[1], [1], [0], [0], [0, 0, 1, 0], [], []>} : vector<16x8xf32>, vector<16x8xf32>, vector<16x16xf32> -> vector<16x16xf32>
    %96 = arith.addf %95, %1 : vector<16x16xf32>
    %cst_38 = arith.constant dense<0xFF800000> : vector<16xf32>
    %97 = vector.multi_reduction <maximumf>, %96, %cst_38 [1] : vector<16x16xf32> to vector<16xf32>
    %98 = vector.shape_cast %97 : vector<16xf32> to vector<16x1xf32>
    %99 = vector.broadcast %98 : vector<16x1xf32> to vector<16x16xf32>
    %100 = arith.subf %96, %99 : vector<16x16xf32>
    %101 = math.exp %100 : vector<16x16xf32>
    %cst_39 = arith.constant dense<0.000000e+00> : vector<16xf32>
    %102 = vector.multi_reduction <add>, %101, %cst_39 [1] : vector<16x16xf32> to vector<16xf32>
    %103 = vector.shape_cast %102 : vector<16xf32> to vector<16x1xf32>
    %104 = tpu.reciprocal %103 {approx = true} : vector<16x1xf32> -> vector<16x1xf32>
    %105 = vector.broadcast %104 : vector<16x1xf32> to vector<16x16xf32>
    %106 = arith.mulf %101, %105 : vector<16x16xf32>
    %cst_40 = arith.constant dense<0.000000e+00> : vector<16x8xf32>
    %107 = tpu.matmul %106, %94, %cst_40 {dimension_numbers = #tpu.dot_dimension_numbers<[1], [0], [0], [1], [0, 0, 1, 1], [], []>} : vector<16x16xf32>, vector<16x8xf32>, vector<16x8xf32> -> vector<16x8xf32>
    %c3 = arith.constant 3 : index
    %c0_41 = arith.constant 0 : index
    %c0_42 = arith.constant 0 : index
    %108 = vector.load %arg5[%c3, %c0_41, %c0_42] : memref<8x8x32xf32, #tpu.memory_space<vmem>>, vector<1x8x32xf32>
    %109 = vector.shape_cast %108 : vector<1x8x32xf32> to vector<8x32xf32>
    %cst_43 = arith.constant dense<0.000000e+00> : vector<16x32xf32>
    %110 = tpu.matmul %107, %109, %cst_43 {dimension_numbers = #tpu.dot_dimension_numbers<[1], [0], [0], [1], [0, 0, 1, 1], [], []>} : vector<16x8xf32>, vector<8x32xf32>, vector<16x32xf32> -> vector<16x32xf32>
    %111 = arith.addf %91, %110 : vector<16x32xf32>
    %112 = arith.addf %0, %111 : vector<16x32xf32>
    %113 = vector.extract_strided_slice %2 {offsets = [2, 0], sizes = [1, 32], strides = [1, 1]} : vector<14x32xf32> to vector<1x32xf32>
    %114 = vector.broadcast %113 : vector<1x32xf32> to vector<16x32xf32>
    %115 = arith.addf %112, %114 : vector<16x32xf32>
    %116 = vector.extract_strided_slice %2 {offsets = [3, 0], sizes = [1, 32], strides = [1, 1]} : vector<14x32xf32> to vector<1x32xf32>
    %117 = vector.extract_strided_slice %2 {offsets = [4, 0], sizes = [1, 32], strides = [1, 1]} : vector<14x32xf32> to vector<1x32xf32>
    %cst_44 = arith.constant dense<0.000000e+00> : vector<16xf32>
    %118 = vector.multi_reduction <add>, %115, %cst_44 [1] : vector<16x32xf32> to vector<16xf32>
    %119 = vector.shape_cast %118 : vector<16xf32> to vector<16x1xf32>
    %cst_45 = arith.constant 3.200000e+01 : f32
    %120 = vector.broadcast %cst_45 : f32 to vector<16x1xf32>
    %121 = arith.divf %119, %120 : vector<16x1xf32>
    %122 = vector.broadcast %121 : vector<16x1xf32> to vector<16x32xf32>
    %123 = arith.subf %115, %122 : vector<16x32xf32>
    %124 = arith.mulf %123, %123 : vector<16x32xf32>
    %cst_46 = arith.constant dense<0.000000e+00> : vector<16xf32>
    %125 = vector.multi_reduction <add>, %124, %cst_46 [1] : vector<16x32xf32> to vector<16xf32>
    %126 = vector.shape_cast %125 : vector<16xf32> to vector<16x1xf32>
    %cst_47 = arith.constant 3.200000e+01 : f32
    %127 = vector.broadcast %cst_47 : f32 to vector<16x1xf32>
    %128 = arith.divf %126, %127 : vector<16x1xf32>
    %129 = vector.broadcast %121 : vector<16x1xf32> to vector<16x32xf32>
    %130 = arith.subf %115, %129 : vector<16x32xf32>
    %cst_48 = arith.constant 9.99999974E-6 : f32
    %131 = vector.broadcast %cst_48 : f32 to vector<16x1xf32>
    %132 = arith.addf %128, %131 : vector<16x1xf32>
    %133 = math.rsqrt %132 : vector<16x1xf32>
    %134 = vector.broadcast %133 : vector<16x1xf32> to vector<16x32xf32>
    %135 = arith.mulf %130, %134 : vector<16x32xf32>
    %136 = vector.broadcast %116 : vector<1x32xf32> to vector<16x32xf32>
    %137 = arith.mulf %135, %136 : vector<16x32xf32>
    %138 = vector.broadcast %117 : vector<1x32xf32> to vector<16x32xf32>
    %139 = arith.addf %137, %138 : vector<16x32xf32>
    %c0_49 = arith.constant 0 : index
    %c0_50 = arith.constant 0 : index
    %c0_51 = arith.constant 0 : index
    %140 = vector.load %arg6[%c0_49, %c0_50, %c0_51] : memref<2x32x64xf32, #tpu.memory_space<vmem>>, vector<1x32x64xf32>
    %141 = vector.shape_cast %140 : vector<1x32x64xf32> to vector<32x64xf32>
    %cst_52 = arith.constant dense<0.000000e+00> : vector<16x64xf32>
    %142 = tpu.matmul %139, %141, %cst_52 {dimension_numbers = #tpu.dot_dimension_numbers<[1], [0], [0], [1], [0, 0, 1, 1], [], []>} : vector<16x32xf32>, vector<32x64xf32>, vector<16x64xf32> -> vector<16x64xf32>
    %c0_53 = arith.constant 0 : index
    %c0_54 = arith.constant 0 : index
    %143 = vector.load %arg7[%c0_53, %c0_54] : memref<2x64xf32, #tpu.memory_space<vmem>>, vector<1x64xf32>
    %144 = vector.broadcast %143 : vector<1x64xf32> to vector<16x64xf32>
    %145 = arith.addf %142, %144 : vector<16x64xf32>
    %cst_55 = arith.constant 0.000000e+00 : f32
    %146 = vector.broadcast %cst_55 : f32 to vector<16x64xf32>
    %147 = arith.maximumf %145, %146 : vector<16x64xf32>
    %c0_56 = arith.constant 0 : index
    %c0_57 = arith.constant 0 : index
    %c0_58 = arith.constant 0 : index
    %148 = vector.load %arg8[%c0_56, %c0_57, %c0_58] : memref<2x64x32xf32, #tpu.memory_space<vmem>>, vector<1x64x32xf32>
    %149 = vector.shape_cast %148 : vector<1x64x32xf32> to vector<64x32xf32>
    %cst_59 = arith.constant dense<0.000000e+00> : vector<16x32xf32>
    %150 = tpu.matmul %147, %149, %cst_59 {dimension_numbers = #tpu.dot_dimension_numbers<[1], [0], [0], [1], [0, 0, 1, 1], [], []>} : vector<16x64xf32>, vector<64x32xf32>, vector<16x32xf32> -> vector<16x32xf32>
    %151 = arith.addf %115, %150 : vector<16x32xf32>
    %152 = vector.extract_strided_slice %2 {offsets = [5, 0], sizes = [1, 32], strides = [1, 1]} : vector<14x32xf32> to vector<1x32xf32>
    %153 = vector.broadcast %152 : vector<1x32xf32> to vector<16x32xf32>
    %154 = arith.addf %151, %153 : vector<16x32xf32>
    %155 = vector.extract_strided_slice %2 {offsets = [6, 0], sizes = [1, 32], strides = [1, 1]} : vector<14x32xf32> to vector<1x32xf32>
    %156 = vector.extract_strided_slice %2 {offsets = [7, 0], sizes = [1, 32], strides = [1, 1]} : vector<14x32xf32> to vector<1x32xf32>
    %cst_60 = arith.constant dense<0.000000e+00> : vector<16xf32>
    %157 = vector.multi_reduction <add>, %154, %cst_60 [1] : vector<16x32xf32> to vector<16xf32>
    %158 = vector.shape_cast %157 : vector<16xf32> to vector<16x1xf32>
    %cst_61 = arith.constant 3.200000e+01 : f32
    %159 = vector.broadcast %cst_61 : f32 to vector<16x1xf32>
    %160 = arith.divf %158, %159 : vector<16x1xf32>
    %161 = vector.broadcast %160 : vector<16x1xf32> to vector<16x32xf32>
    %162 = arith.subf %154, %161 : vector<16x32xf32>
    %163 = arith.mulf %162, %162 : vector<16x32xf32>
    %cst_62 = arith.constant dense<0.000000e+00> : vector<16xf32>
    %164 = vector.multi_reduction <add>, %163, %cst_62 [1] : vector<16x32xf32> to vector<16xf32>
    %165 = vector.shape_cast %164 : vector<16xf32> to vector<16x1xf32>
    %cst_63 = arith.constant 3.200000e+01 : f32
    %166 = vector.broadcast %cst_63 : f32 to vector<16x1xf32>
    %167 = arith.divf %165, %166 : vector<16x1xf32>
    %168 = vector.broadcast %160 : vector<16x1xf32> to vector<16x32xf32>
    %169 = arith.subf %154, %168 : vector<16x32xf32>
    %cst_64 = arith.constant 9.99999974E-6 : f32
    %170 = vector.broadcast %cst_64 : f32 to vector<16x1xf32>
    %171 = arith.addf %167, %170 : vector<16x1xf32>
    %172 = math.rsqrt %171 : vector<16x1xf32>
    %173 = vector.broadcast %172 : vector<16x1xf32> to vector<16x32xf32>
    %174 = arith.mulf %169, %173 : vector<16x32xf32>
    %175 = vector.broadcast %155 : vector<1x32xf32> to vector<16x32xf32>
    %176 = arith.mulf %174, %175 : vector<16x32xf32>
    %177 = vector.broadcast %156 : vector<1x32xf32> to vector<16x32xf32>
    %178 = arith.addf %176, %177 : vector<16x32xf32>
    %c1_65 = arith.constant 1 : index
    %c0_66 = arith.constant 0 : index
    %c0_67 = arith.constant 0 : index
    %179 = vector.load %arg3[%c1_65, %c0_66, %c0_67] : memref<2x32x96xf32, #tpu.memory_space<vmem>>, vector<1x32x96xf32>
    %180 = vector.shape_cast %179 : vector<1x32x96xf32> to vector<32x96xf32>
    %cst_68 = arith.constant dense<0.000000e+00> : vector<16x96xf32>
    %181 = tpu.matmul %178, %180, %cst_68 {dimension_numbers = #tpu.dot_dimension_numbers<[1], [0], [0], [1], [0, 0, 1, 1], [], []>} : vector<16x32xf32>, vector<32x96xf32>, vector<16x96xf32> -> vector<16x96xf32>
    %c1_69 = arith.constant 1 : index
    %c0_70 = arith.constant 0 : index
    %182 = vector.load %arg4[%c1_69, %c0_70] : memref<2x96xf32, #tpu.memory_space<vmem>>, vector<1x96xf32>
    %183 = vector.broadcast %182 : vector<1x96xf32> to vector<16x96xf32>
    %184 = arith.addf %181, %183 : vector<16x96xf32>
    %185 = vector.extract_strided_slice %184 {offsets = [0, 0], sizes = [16, 8], strides = [1, 1]} : vector<16x96xf32> to vector<16x8xf32>
    %186 = vector.extract_strided_slice %184 {offsets = [0, 32], sizes = [16, 8], strides = [1, 1]} : vector<16x96xf32> to vector<16x8xf32>
    %187 = vector.extract_strided_slice %184 {offsets = [0, 64], sizes = [16, 8], strides = [1, 1]} : vector<16x96xf32> to vector<16x8xf32>
    %cst_71 = arith.constant dense<0.000000e+00> : vector<16x16xf32>
    %188 = tpu.matmul %185, %186, %cst_71 {dimension_numbers = #tpu.dot_dimension_numbers<[1], [1], [0], [0], [0, 0, 1, 0], [], []>} : vector<16x8xf32>, vector<16x8xf32>, vector<16x16xf32> -> vector<16x16xf32>
    %189 = arith.addf %188, %1 : vector<16x16xf32>
    %cst_72 = arith.constant dense<0xFF800000> : vector<16xf32>
    %190 = vector.multi_reduction <maximumf>, %189, %cst_72 [1] : vector<16x16xf32> to vector<16xf32>
    %191 = vector.shape_cast %190 : vector<16xf32> to vector<16x1xf32>
    %192 = vector.broadcast %191 : vector<16x1xf32> to vector<16x16xf32>
    %193 = arith.subf %189, %192 : vector<16x16xf32>
    %194 = math.exp %193 : vector<16x16xf32>
    %cst_73 = arith.constant dense<0.000000e+00> : vector<16xf32>
    %195 = vector.multi_reduction <add>, %194, %cst_73 [1] : vector<16x16xf32> to vector<16xf32>
    %196 = vector.shape_cast %195 : vector<16xf32> to vector<16x1xf32>
    %197 = tpu.reciprocal %196 {approx = true} : vector<16x1xf32> -> vector<16x1xf32>
    %198 = vector.broadcast %197 : vector<16x1xf32> to vector<16x16xf32>
    %199 = arith.mulf %194, %198 : vector<16x16xf32>
    %cst_74 = arith.constant dense<0.000000e+00> : vector<16x8xf32>
    %200 = tpu.matmul %199, %187, %cst_74 {dimension_numbers = #tpu.dot_dimension_numbers<[1], [0], [0], [1], [0, 0, 1, 1], [], []>} : vector<16x16xf32>, vector<16x8xf32>, vector<16x8xf32> -> vector<16x8xf32>
    %c4 = arith.constant 4 : index
    %c0_75 = arith.constant 0 : index
    %c0_76 = arith.constant 0 : index
    %201 = vector.load %arg5[%c4, %c0_75, %c0_76] : memref<8x8x32xf32, #tpu.memory_space<vmem>>, vector<1x8x32xf32>
    %202 = vector.shape_cast %201 : vector<1x8x32xf32> to vector<8x32xf32>
    %cst_77 = arith.constant dense<0.000000e+00> : vector<16x32xf32>
    %203 = tpu.matmul %200, %202, %cst_77 {dimension_numbers = #tpu.dot_dimension_numbers<[1], [0], [0], [1], [0, 0, 1, 1], [], []>} : vector<16x8xf32>, vector<8x32xf32>, vector<16x32xf32> -> vector<16x32xf32>
    %204 = vector.extract_strided_slice %184 {offsets = [0, 8], sizes = [16, 8], strides = [1, 1]} : vector<16x96xf32> to vector<16x8xf32>
    %205 = vector.extract_strided_slice %184 {offsets = [0, 40], sizes = [16, 8], strides = [1, 1]} : vector<16x96xf32> to vector<16x8xf32>
    %206 = vector.extract_strided_slice %184 {offsets = [0, 72], sizes = [16, 8], strides = [1, 1]} : vector<16x96xf32> to vector<16x8xf32>
    %cst_78 = arith.constant dense<0.000000e+00> : vector<16x16xf32>
    %207 = tpu.matmul %204, %205, %cst_78 {dimension_numbers = #tpu.dot_dimension_numbers<[1], [1], [0], [0], [0, 0, 1, 0], [], []>} : vector<16x8xf32>, vector<16x8xf32>, vector<16x16xf32> -> vector<16x16xf32>
    %208 = arith.addf %207, %1 : vector<16x16xf32>
    %cst_79 = arith.constant dense<0xFF800000> : vector<16xf32>
    %209 = vector.multi_reduction <maximumf>, %208, %cst_79 [1] : vector<16x16xf32> to vector<16xf32>
    %210 = vector.shape_cast %209 : vector<16xf32> to vector<16x1xf32>
    %211 = vector.broadcast %210 : vector<16x1xf32> to vector<16x16xf32>
    %212 = arith.subf %208, %211 : vector<16x16xf32>
    %213 = math.exp %212 : vector<16x16xf32>
    %cst_80 = arith.constant dense<0.000000e+00> : vector<16xf32>
    %214 = vector.multi_reduction <add>, %213, %cst_80 [1] : vector<16x16xf32> to vector<16xf32>
    %215 = vector.shape_cast %214 : vector<16xf32> to vector<16x1xf32>
    %216 = tpu.reciprocal %215 {approx = true} : vector<16x1xf32> -> vector<16x1xf32>
    %217 = vector.broadcast %216 : vector<16x1xf32> to vector<16x16xf32>
    %218 = arith.mulf %213, %217 : vector<16x16xf32>
    %cst_81 = arith.constant dense<0.000000e+00> : vector<16x8xf32>
    %219 = tpu.matmul %218, %206, %cst_81 {dimension_numbers = #tpu.dot_dimension_numbers<[1], [0], [0], [1], [0, 0, 1, 1], [], []>} : vector<16x16xf32>, vector<16x8xf32>, vector<16x8xf32> -> vector<16x8xf32>
    %c5 = arith.constant 5 : index
    %c0_82 = arith.constant 0 : index
    %c0_83 = arith.constant 0 : index
    %220 = vector.load %arg5[%c5, %c0_82, %c0_83] : memref<8x8x32xf32, #tpu.memory_space<vmem>>, vector<1x8x32xf32>
    %221 = vector.shape_cast %220 : vector<1x8x32xf32> to vector<8x32xf32>
    %cst_84 = arith.constant dense<0.000000e+00> : vector<16x32xf32>
    %222 = tpu.matmul %219, %221, %cst_84 {dimension_numbers = #tpu.dot_dimension_numbers<[1], [0], [0], [1], [0, 0, 1, 1], [], []>} : vector<16x8xf32>, vector<8x32xf32>, vector<16x32xf32> -> vector<16x32xf32>
    %223 = arith.addf %203, %222 : vector<16x32xf32>
    %224 = vector.extract_strided_slice %184 {offsets = [0, 16], sizes = [16, 8], strides = [1, 1]} : vector<16x96xf32> to vector<16x8xf32>
    %225 = vector.extract_strided_slice %184 {offsets = [0, 48], sizes = [16, 8], strides = [1, 1]} : vector<16x96xf32> to vector<16x8xf32>
    %226 = vector.extract_strided_slice %184 {offsets = [0, 80], sizes = [16, 8], strides = [1, 1]} : vector<16x96xf32> to vector<16x8xf32>
    %cst_85 = arith.constant dense<0.000000e+00> : vector<16x16xf32>
    %227 = tpu.matmul %224, %225, %cst_85 {dimension_numbers = #tpu.dot_dimension_numbers<[1], [1], [0], [0], [0, 0, 1, 0], [], []>} : vector<16x8xf32>, vector<16x8xf32>, vector<16x16xf32> -> vector<16x16xf32>
    %228 = arith.addf %227, %1 : vector<16x16xf32>
    %cst_86 = arith.constant dense<0xFF800000> : vector<16xf32>
    %229 = vector.multi_reduction <maximumf>, %228, %cst_86 [1] : vector<16x16xf32> to vector<16xf32>
    %230 = vector.shape_cast %229 : vector<16xf32> to vector<16x1xf32>
    %231 = vector.broadcast %230 : vector<16x1xf32> to vector<16x16xf32>
    %232 = arith.subf %228, %231 : vector<16x16xf32>
    %233 = math.exp %232 : vector<16x16xf32>
    %cst_87 = arith.constant dense<0.000000e+00> : vector<16xf32>
    %234 = vector.multi_reduction <add>, %233, %cst_87 [1] : vector<16x16xf32> to vector<16xf32>
    %235 = vector.shape_cast %234 : vector<16xf32> to vector<16x1xf32>
    %236 = tpu.reciprocal %235 {approx = true} : vector<16x1xf32> -> vector<16x1xf32>
    %237 = vector.broadcast %236 : vector<16x1xf32> to vector<16x16xf32>
    %238 = arith.mulf %233, %237 : vector<16x16xf32>
    %cst_88 = arith.constant dense<0.000000e+00> : vector<16x8xf32>
    %239 = tpu.matmul %238, %226, %cst_88 {dimension_numbers = #tpu.dot_dimension_numbers<[1], [0], [0], [1], [0, 0, 1, 1], [], []>} : vector<16x16xf32>, vector<16x8xf32>, vector<16x8xf32> -> vector<16x8xf32>
    %c6 = arith.constant 6 : index
    %c0_89 = arith.constant 0 : index
    %c0_90 = arith.constant 0 : index
    %240 = vector.load %arg5[%c6, %c0_89, %c0_90] : memref<8x8x32xf32, #tpu.memory_space<vmem>>, vector<1x8x32xf32>
    %241 = vector.shape_cast %240 : vector<1x8x32xf32> to vector<8x32xf32>
    %cst_91 = arith.constant dense<0.000000e+00> : vector<16x32xf32>
    %242 = tpu.matmul %239, %241, %cst_91 {dimension_numbers = #tpu.dot_dimension_numbers<[1], [0], [0], [1], [0, 0, 1, 1], [], []>} : vector<16x8xf32>, vector<8x32xf32>, vector<16x32xf32> -> vector<16x32xf32>
    %243 = arith.addf %223, %242 : vector<16x32xf32>
    %244 = vector.extract_strided_slice %184 {offsets = [0, 24], sizes = [16, 8], strides = [1, 1]} : vector<16x96xf32> to vector<16x8xf32>
    %245 = vector.extract_strided_slice %184 {offsets = [0, 56], sizes = [16, 8], strides = [1, 1]} : vector<16x96xf32> to vector<16x8xf32>
    %246 = vector.extract_strided_slice %184 {offsets = [0, 88], sizes = [16, 8], strides = [1, 1]} : vector<16x96xf32> to vector<16x8xf32>
    %cst_92 = arith.constant dense<0.000000e+00> : vector<16x16xf32>
    %247 = tpu.matmul %244, %245, %cst_92 {dimension_numbers = #tpu.dot_dimension_numbers<[1], [1], [0], [0], [0, 0, 1, 0], [], []>} : vector<16x8xf32>, vector<16x8xf32>, vector<16x16xf32> -> vector<16x16xf32>
    %248 = arith.addf %247, %1 : vector<16x16xf32>
    %cst_93 = arith.constant dense<0xFF800000> : vector<16xf32>
    %249 = vector.multi_reduction <maximumf>, %248, %cst_93 [1] : vector<16x16xf32> to vector<16xf32>
    %250 = vector.shape_cast %249 : vector<16xf32> to vector<16x1xf32>
    %251 = vector.broadcast %250 : vector<16x1xf32> to vector<16x16xf32>
    %252 = arith.subf %248, %251 : vector<16x16xf32>
    %253 = math.exp %252 : vector<16x16xf32>
    %cst_94 = arith.constant dense<0.000000e+00> : vector<16xf32>
    %254 = vector.multi_reduction <add>, %253, %cst_94 [1] : vector<16x16xf32> to vector<16xf32>
    %255 = vector.shape_cast %254 : vector<16xf32> to vector<16x1xf32>
    %256 = tpu.reciprocal %255 {approx = true} : vector<16x1xf32> -> vector<16x1xf32>
    %257 = vector.broadcast %256 : vector<16x1xf32> to vector<16x16xf32>
    %258 = arith.mulf %253, %257 : vector<16x16xf32>
    %cst_95 = arith.constant dense<0.000000e+00> : vector<16x8xf32>
    %259 = tpu.matmul %258, %246, %cst_95 {dimension_numbers = #tpu.dot_dimension_numbers<[1], [0], [0], [1], [0, 0, 1, 1], [], []>} : vector<16x16xf32>, vector<16x8xf32>, vector<16x8xf32> -> vector<16x8xf32>
    %c7 = arith.constant 7 : index
    %c0_96 = arith.constant 0 : index
    %c0_97 = arith.constant 0 : index
    %260 = vector.load %arg5[%c7, %c0_96, %c0_97] : memref<8x8x32xf32, #tpu.memory_space<vmem>>, vector<1x8x32xf32>
    %261 = vector.shape_cast %260 : vector<1x8x32xf32> to vector<8x32xf32>
    %cst_98 = arith.constant dense<0.000000e+00> : vector<16x32xf32>
    %262 = tpu.matmul %259, %261, %cst_98 {dimension_numbers = #tpu.dot_dimension_numbers<[1], [0], [0], [1], [0, 0, 1, 1], [], []>} : vector<16x8xf32>, vector<8x32xf32>, vector<16x32xf32> -> vector<16x32xf32>
    %263 = arith.addf %243, %262 : vector<16x32xf32>
    %264 = arith.addf %154, %263 : vector<16x32xf32>
    %265 = vector.extract_strided_slice %2 {offsets = [8, 0], sizes = [1, 32], strides = [1, 1]} : vector<14x32xf32> to vector<1x32xf32>
    %266 = vector.broadcast %265 : vector<1x32xf32> to vector<16x32xf32>
    %267 = arith.addf %264, %266 : vector<16x32xf32>
    %268 = vector.extract_strided_slice %2 {offsets = [9, 0], sizes = [1, 32], strides = [1, 1]} : vector<14x32xf32> to vector<1x32xf32>
    %269 = vector.extract_strided_slice %2 {offsets = [10, 0], sizes = [1, 32], strides = [1, 1]} : vector<14x32xf32> to vector<1x32xf32>
    %cst_99 = arith.constant dense<0.000000e+00> : vector<16xf32>
    %270 = vector.multi_reduction <add>, %267, %cst_99 [1] : vector<16x32xf32> to vector<16xf32>
    %271 = vector.shape_cast %270 : vector<16xf32> to vector<16x1xf32>
    %cst_100 = arith.constant 3.200000e+01 : f32
    %272 = vector.broadcast %cst_100 : f32 to vector<16x1xf32>
    %273 = arith.divf %271, %272 : vector<16x1xf32>
    %274 = vector.broadcast %273 : vector<16x1xf32> to vector<16x32xf32>
    %275 = arith.subf %267, %274 : vector<16x32xf32>
    %276 = arith.mulf %275, %275 : vector<16x32xf32>
    %cst_101 = arith.constant dense<0.000000e+00> : vector<16xf32>
    %277 = vector.multi_reduction <add>, %276, %cst_101 [1] : vector<16x32xf32> to vector<16xf32>
    %278 = vector.shape_cast %277 : vector<16xf32> to vector<16x1xf32>
    %cst_102 = arith.constant 3.200000e+01 : f32
    %279 = vector.broadcast %cst_102 : f32 to vector<16x1xf32>
    %280 = arith.divf %278, %279 : vector<16x1xf32>
    %281 = vector.broadcast %273 : vector<16x1xf32> to vector<16x32xf32>
    %282 = arith.subf %267, %281 : vector<16x32xf32>
    %cst_103 = arith.constant 9.99999974E-6 : f32
    %283 = vector.broadcast %cst_103 : f32 to vector<16x1xf32>
    %284 = arith.addf %280, %283 : vector<16x1xf32>
    %285 = math.rsqrt %284 : vector<16x1xf32>
    %286 = vector.broadcast %285 : vector<16x1xf32> to vector<16x32xf32>
    %287 = arith.mulf %282, %286 : vector<16x32xf32>
    %288 = vector.broadcast %268 : vector<1x32xf32> to vector<16x32xf32>
    %289 = arith.mulf %287, %288 : vector<16x32xf32>
    %290 = vector.broadcast %269 : vector<1x32xf32> to vector<16x32xf32>
    %291 = arith.addf %289, %290 : vector<16x32xf32>
    %c1_104 = arith.constant 1 : index
    %c0_105 = arith.constant 0 : index
    %c0_106 = arith.constant 0 : index
    %292 = vector.load %arg6[%c1_104, %c0_105, %c0_106] : memref<2x32x64xf32, #tpu.memory_space<vmem>>, vector<1x32x64xf32>
    %293 = vector.shape_cast %292 : vector<1x32x64xf32> to vector<32x64xf32>
    %cst_107 = arith.constant dense<0.000000e+00> : vector<16x64xf32>
    %294 = tpu.matmul %291, %293, %cst_107 {dimension_numbers = #tpu.dot_dimension_numbers<[1], [0], [0], [1], [0, 0, 1, 1], [], []>} : vector<16x32xf32>, vector<32x64xf32>, vector<16x64xf32> -> vector<16x64xf32>
    %c1_108 = arith.constant 1 : index
    %c0_109 = arith.constant 0 : index
    %295 = vector.load %arg7[%c1_108, %c0_109] : memref<2x64xf32, #tpu.memory_space<vmem>>, vector<1x64xf32>
    %296 = vector.broadcast %295 : vector<1x64xf32> to vector<16x64xf32>
    %297 = arith.addf %294, %296 : vector<16x64xf32>
    %cst_110 = arith.constant 0.000000e+00 : f32
    %298 = vector.broadcast %cst_110 : f32 to vector<16x64xf32>
    %299 = arith.maximumf %297, %298 : vector<16x64xf32>
    %c1_111 = arith.constant 1 : index
    %c0_112 = arith.constant 0 : index
    %c0_113 = arith.constant 0 : index
    %300 = vector.load %arg8[%c1_111, %c0_112, %c0_113] : memref<2x64x32xf32, #tpu.memory_space<vmem>>, vector<1x64x32xf32>
    %301 = vector.shape_cast %300 : vector<1x64x32xf32> to vector<64x32xf32>
    %cst_114 = arith.constant dense<0.000000e+00> : vector<16x32xf32>
    %302 = tpu.matmul %299, %301, %cst_114 {dimension_numbers = #tpu.dot_dimension_numbers<[1], [0], [0], [1], [0, 0, 1, 1], [], []>} : vector<16x64xf32>, vector<64x32xf32>, vector<16x32xf32> -> vector<16x32xf32>
    %303 = arith.addf %267, %302 : vector<16x32xf32>
    %304 = vector.extract_strided_slice %2 {offsets = [11, 0], sizes = [1, 32], strides = [1, 1]} : vector<14x32xf32> to vector<1x32xf32>
    %305 = vector.broadcast %304 : vector<1x32xf32> to vector<16x32xf32>
    %306 = arith.addf %303, %305 : vector<16x32xf32>
    %307 = vector.extract_strided_slice %2 {offsets = [12, 0], sizes = [1, 32], strides = [1, 1]} : vector<14x32xf32> to vector<1x32xf32>
    %308 = vector.extract_strided_slice %2 {offsets = [13, 0], sizes = [1, 32], strides = [1, 1]} : vector<14x32xf32> to vector<1x32xf32>
    %cst_115 = arith.constant dense<0.000000e+00> : vector<16xf32>
    %309 = vector.multi_reduction <add>, %306, %cst_115 [1] : vector<16x32xf32> to vector<16xf32>
    %310 = vector.shape_cast %309 : vector<16xf32> to vector<16x1xf32>
    %cst_116 = arith.constant 3.200000e+01 : f32
    %311 = vector.broadcast %cst_116 : f32 to vector<16x1xf32>
    %312 = arith.divf %310, %311 : vector<16x1xf32>
    %313 = vector.broadcast %312 : vector<16x1xf32> to vector<16x32xf32>
    %314 = arith.subf %306, %313 : vector<16x32xf32>
    %315 = arith.mulf %314, %314 : vector<16x32xf32>
    %cst_117 = arith.constant dense<0.000000e+00> : vector<16xf32>
    %316 = vector.multi_reduction <add>, %315, %cst_117 [1] : vector<16x32xf32> to vector<16xf32>
    %317 = vector.shape_cast %316 : vector<16xf32> to vector<16x1xf32>
    %cst_118 = arith.constant 3.200000e+01 : f32
    %318 = vector.broadcast %cst_118 : f32 to vector<16x1xf32>
    %319 = arith.divf %317, %318 : vector<16x1xf32>
    %320 = vector.broadcast %312 : vector<16x1xf32> to vector<16x32xf32>
    %321 = arith.subf %306, %320 : vector<16x32xf32>
    %cst_119 = arith.constant 9.99999974E-6 : f32
    %322 = vector.broadcast %cst_119 : f32 to vector<16x1xf32>
    %323 = arith.addf %319, %322 : vector<16x1xf32>
    %324 = math.rsqrt %323 : vector<16x1xf32>
    %325 = vector.broadcast %324 : vector<16x1xf32> to vector<16x32xf32>
    %326 = arith.mulf %321, %325 : vector<16x32xf32>
    %327 = vector.broadcast %307 : vector<1x32xf32> to vector<16x32xf32>
    %328 = arith.mulf %326, %327 : vector<16x32xf32>
    %329 = vector.broadcast %308 : vector<1x32xf32> to vector<16x32xf32>
    %330 = arith.addf %328, %329 : vector<16x32xf32>
    %c0_120 = arith.constant 0 : index
    %c0_121 = arith.constant 0 : index
    %331 = vector.load %arg10[%c0_120, %c0_121] : memref<16x32xf32, #tpu.memory_space<vmem>>, vector<16x32xf32>
    tpu.vector_store %arg10[%c0_120, %c0_121], %330 {strides = array<i32>} : memref<16x32xf32, #tpu.memory_space<vmem>>, vector<16x32xf32>,
    return
  }
  func.func @transform_0(%arg0: i32) -> (i32, i32) {
    %c0_i32 = arith.constant 0 : i32
    %c0_i32_0 = arith.constant 0 : i32
    %c0_i32_1 = arith.constant 0 : i32
    return %c0_i32, %c0_i32_0 : i32, i32
  }
  func.func @transform_1(%arg0: i32) -> (i32, i32) {
    %c0_i32 = arith.constant 0 : i32
    %c0_i32_0 = arith.constant 0 : i32
    %c0_i32_1 = arith.constant 0 : i32
    return %c0_i32, %c0_i32_0 : i32, i32
  }
  func.func @transform_2(%arg0: i32) -> (i32, i32, i32) {
    %c0_i32 = arith.constant 0 : i32
    %c0_i32_0 = arith.constant 0 : i32
    %c0_i32_1 = arith.constant 0 : i32
    %c0_i32_2 = arith.constant 0 : i32
    return %c0_i32, %c0_i32_0, %c0_i32_1 : i32, i32, i32
  }
  func.func @transform_3(%arg0: i32) -> (i32, i32) {
    %c0_i32 = arith.constant 0 : i32
    %c0_i32_0 = arith.constant 0 : i32
    %c0_i32_1 = arith.constant 0 : i32
    return %c0_i32, %c0_i32_0 : i32, i32
  }
  func.func @transform_4(%arg0: i32) -> (i32, i32, i32) {
    %c0_i32 = arith.constant 0 : i32
    %c0_i32_0 = arith.constant 0 : i32
    %c0_i32_1 = arith.constant 0 : i32
    %c0_i32_2 = arith.constant 0 : i32
    return %c0_i32, %c0_i32_0, %c0_i32_1 : i32, i32, i32
  }
  func.func @transform_5(%arg0: i32) -> (i32, i32, i32) {
    %c0_i32 = arith.constant 0 : i32
    %c0_i32_0 = arith.constant 0 : i32
    %c0_i32_1 = arith.constant 0 : i32
    %c0_i32_2 = arith.constant 0 : i32
    return %c0_i32, %c0_i32_0, %c0_i32_1 : i32, i32, i32
  }
  func.func @transform_6(%arg0: i32) -> (i32, i32) {
    %c0_i32 = arith.constant 0 : i32
    %c0_i32_0 = arith.constant 0 : i32
    %c0_i32_1 = arith.constant 0 : i32
    return %c0_i32, %c0_i32_0 : i32, i32
  }
  func.func @transform_7(%arg0: i32) -> (i32, i32, i32) {
    %c0_i32 = arith.constant 0 : i32
    %c0_i32_0 = arith.constant 0 : i32
    %c0_i32_1 = arith.constant 0 : i32
    %c0_i32_2 = arith.constant 0 : i32
    return %c0_i32, %c0_i32_0, %c0_i32_1 : i32, i32, i32
  }
  func.func @transform_8(%arg0: i32) -> (i32, i32) {
    %c0_i32 = arith.constant 0 : i32
    %c0_i32_0 = arith.constant 0 : i32
    %c0_i32_1 = arith.constant 0 : i32
    return %c0_i32, %c0_i32_0 : i32, i32
  }
  func.func @transform_9(%arg0: i32) -> (i32, i32) {
    %c0_i32 = arith.constant 0 : i32
    %c0_i32_0 = arith.constant 0 : i32
    %c0_i32_1 = arith.constant 0 : i32
    return %c0_i32, %c0_i32_0 : i32, i32
  }
}

</mosaic_0001>

<bundles_post_ra>
// kernel: tpu_custom_call.1
= control target key start
LH: loop header
LB: loop body
LE: loop exit
PB: predicated region body
PF: predicated region fallthrough
CT: control target
= control target key end

     0   :  { %14 = vsyncpa [#allocation3], 0  ;;  %s4592_s0 = inlined_call_operand.hbm [shape: f32[16,32], index: 0, kind: input, shape index: {}]   ;;  %s4593_s1 = inlined_call_operand.hbm [shape: f32[16,16], index: 1, kind: input, shape index: {}]   ;;  %s4594_s2 = inlined_call_operand.vmem [shape: f32[2,32,96], index: 2, kind: input, shape index: {}]   ;;  %s4595_s3 = inlined_call_operand.vmem [shape: f32[2,96], index: 3, kind: input, shape index: {}]   ;;  %s4596_s4 = inlined_call_operand.vmem [shape: f32[8,8,32], index: 4, kind: input, shape index: {}]   ;;  %s4597_s5 = inlined_call_operand.vmem [shape: f32[2,32,64], index: 5, kind: input, shape index: {}]   ;;  %s4598_s6 = inlined_call_operand.vmem [shape: f32[2,64], index: 6, kind: input, shape index: {}]   ;;  %s4599_s7 = inlined_call_operand.vmem [shape: f32[2,64,32], index: 7, kind: input, shape index: {}]   ;;  %s4600_s8 = inlined_call_operand.vmem [shape: f32[14,32], index: 8, kind: input, shape index: {}]   ;;  %s4601_s9 = inlined_call_operand.hbm [shape: f32[16,32], index: 9, kind: output, shape index: {}]  }
   0x1   :  { %15 = vsyncpa [#allocation6], 0 }
   0x2   :  { %16 = vsyncpa [#allocation4], 0  ;;  %s4005_s30 = smov [#allocation2]   ;;  %s3933_s13 = scalar_lea.hbm %s4592_s0, 256 }
   0x3   :  { %s22_s10 = sshll.u32 %s4005_s30, 4  ;;  %p3934_p0 = scmp.ne.s32.totalorder %s4592_s0, %s3933_s13  ;;  %s23_s10 = int_to_ptr.vmem [resolvable:$true] %s22_s10 }
   0x4   :  { %p3937_p1 = scmp.lt.u32.totalorder %s3933_s13, %s4592_s0 }
   0x6   :  { %p3939_p2 = pnand %p3937_p1, %p3934_p0 }
   0x8   :  { %3942 = shalt.err (!%p3939_p2)
}
   0x9   :  { %s3943_s18 = scalar_lea.vmem %s23_s10, 256  ;;  %p3948_p4 = scmp.lt.s32.totalorder %s23_s10, %s23_s10 }
   0xa   :  { %p3944_p3 = scmp.ne.s32.totalorder %s23_s10, %s3943_s18  ;;  %p3949_p5 = scmp.lt.s32.totalorder %s3943_s18, %s3943_s18 }
   0xc   :  { %p3950_p6 = por %p3949_p5, %p3948_p4 }
   0xe   :  { %p3951_p7 = pnand %p3950_p6, %p3944_p3 }
  0x10   :  { %3954 = shalt.err (!%p3951_p7)
}
  0x11   :  { %s4006_s19 = smov 128   ;;  %s4007_s20 = smov 8  }
  0x12   :  { %28 = dma.hbm_to_vmem [thread:$0]  %s4592_s0, 256, %s23_s10, [#allocation3], %s4006_s19, %s4006_s19, %s4007_s20  }
  0x13   :  { %s4008_s23 = smov [#allocation5]   ;;  %s3955_s27 = scalar_lea.hbm %s4593_s1, 256 }
  0x14   :  { %s34_s24 = sshll.u32 %s4008_s23, 4  ;;  %p3956_p8 = scmp.ne.s32.totalorder %s4593_s1, %s3955_s27  ;;  %s35_s24 = int_to_ptr.vmem [resolvable:$true] %s34_s24 }
  0x15   :  { %p3959_p9 = scmp.lt.u32.totalorder %s3955_s27, %s4593_s1 }
  0x17   :  { %p3961_p10 = pnand %p3959_p9, %p3956_p8 }
  0x19   :  { %3964 = shalt.err (!%p3961_p10)
}
  0x1a   :  { %s3965_s12 = scalar_lea.vmem %s35_s24, 256  ;;  %p3970_p12 = scmp.lt.s32.totalorder %s35_s24, %s35_s24 }
  0x1b   :  { %p3966_p11 = scmp.ne.s32.totalorder %s35_s24, %s3965_s12  ;;  %p3971_p13 = scmp.lt.s32.totalorder %s3965_s12, %s3965_s12 }
  0x1d   :  { %p3972_p0 = por %p3971_p13, %p3970_p12 }
  0x1f   :  { %p3973_p1 = pnand %p3972_p0, %p3966_p11 }
  0x21   :  { %3976 = shalt.err (!%p3973_p1)
}
  0x22   :  { %40 = dma.hbm_to_vmem [thread:$0]  %s4593_s1, 256, %s35_s24, [#allocation6], %s4006_s19, %s4006_s19, %s4007_s20  }
  0x23   :  { %3999 = dma.done.wait [#allocation3], 256  }
  0x24   :  { %4000 = vsyncadd [#allocation3], 4294967040 }
  0x25   :  { %4001 = dma.done.wait [#allocation6], 256  }
  0x26   :  { %4002 = vsyncadd [#allocation6], 4294967040  ;;  %vm67_vm0 = vcmask 261120   ;;  %v4101_v0 = vld [vmem:[#allocation2] sm:$0xff]  ;;  %v4103_v1 = vld [vmem:[#allocation2 + $0x8] sm:$0xff]  ;;  %v95_v22 = vlaneseq  ;;  %vm203_vm1 = vcmask 64512  }
  0x27   :  { %v68_v2 = vsel %vm67_vm0, %v4101_v0, 0.0  ;;  %v71_v3 = vsel %vm67_vm0, %v4103_v1, 0.0  ;;  %v107_v14 = vld [vmem:[%s4594_s2] sm:$0xff]  ;;  %v108_v15 = vld [vmem:[%s4594_s2 + $0x8] sm:$0xff]  ;;  %v109_v16 = vld [vmem:[%s4594_s2 + $0x10] sm:$0xff]  ;;  %s4009_s26 = smov 88  }
  0x28   :  { %69 = vadd.xlane.f32.xlu0 %v68_v2  ;;  %v3595_v17 = vpack.c.bf16 %v108_v15, %v107_v14  ;;  %v110_v18 = vld [vmem:[%s4594_s2 + $0x18] sm:$0xff]  ;;  %v4125_v26 = vshrl.u32 %v95_v22, 7  ;;  %v4131_v29 = vld [vmem:[%s4600_s8] sm:$0xff]  ;;  %s4010_s27 = smov 96   ;;  %s4011_s28 = smov 120   ;;  %vm4171_vm2 = vmpackc.low %vm203_vm1, %vm203_vm1  ;;  %vm287_vm3 = vcmask 130048  }
  0x29   :  { %v3599_v19 = vpack.c.bf16 %v110_v18, %v109_v16  ;;  %v3126_v41 = vld [vmem:[%s4595_s3] ss:$0 sm:$0xff]  ;;  %s4012_s29 = smov 80   ;;  %s4013_s30 = smov 112   ;;  %v4193_v2 = vld [vmem:[#allocation5 + $0x8] sm:$0xff]  ;;  %vm1478_vm4 = vcmask 523264  }
  0x2a   :  { %3596 = vmatprep.subr.bf16.mxu1 %v3595_v17  ;;  %v97_v28 = vsub.s32 0, %v4125_v26  ;;  %v103_v30 = vsub.s32 1, %v4125_v26  ;;  %s4014_s11 = smov 64   ;;  %s4015_s12 = smov 72  }
  0x2b   :  { %3598 = vmatpush3.bf16.msra.mxu1 %v3595_v17  ;;  %s4016_s0 = smov 104   ;;  %s4017_s10 = smov 56  }
  0x2c   :  { %72 = vadd.xlane.f32.xlu0 %v71_v3  ;;  %3600 = vmatprep.subr.bf16.mxu1 %v3599_v19  ;;  %v98_v31 = vrot.slane %v4131_v29, %v97_v28  ;;  %v104_v34 = vrot.slane %v4131_v29, %v103_v30  ;;  %v4195_v3 = vld [vmem:[#allocation5] sm:$0xff]  ;;  %s4018_s16 = smov 48   ;;  %s4019_s21 = smov 40  }
  0x2f   :  { %3602 = vmatpush3.bf16.msra.mxu1 %v3599_v19 }
  0xb5   :  { %v70_v4 = vpop.xlane.xlu0 %69 }
  0xb6   :  { %v75_v5 = vmul.f32 0.03125, %v70_v4 }
  0xb8   :  { %v77_v6 = vsub.f32 %v4101_v0, %v75_v5 }
  0xb9   :  { %v73_v7 = vpop.xlane.xlu0 %72 }
  0xba   :  { %v76_v8 = vmul.f32 0.03125, %v73_v7  ;;  %v79_v9 = vmul.f32 %v77_v6, %v77_v6 }
  0xbc   :  { %v78_v10 = vsub.f32 %v4103_v1, %v76_v8  ;;  %v81_v11 = vsel %vm67_vm0, %v79_v9, 0.0 }
  0xbd   :  { %82 = vadd.xlane.f32.xlu1 %v81_v11 }
  0xbe   :  { %v80_v12 = vmul.f32 %v78_v10, %v78_v10 }
  0xc0   :  { %v84_v13 = vsel %vm67_vm0, %v80_v12, 0.0 }
  0xc1   :  { %85 = vadd.xlane.f32.xlu1 %v84_v13 }
 0x14a   :  { %v83_v20 = vpop.xlane.xlu1 %82 }
 0x14b   :  { %v87_v21 = vmul.f32 0.03125, %v83_v20 }
 0x14d   :  { %v89_v23 = vadd.f32 1e-05, %v87_v21 }
 0x14e   :  { %v86_v24 = vpop.xlane.xlu1 %85 }
 0x14f   :  { %3847 = vrsqrt.f32 %v89_v23  ;;  %v88_v25 = vmul.f32 0.03125, %v86_v24 }
 0x151   :  { %v90_v27 = vadd.f32 1e-05, %v88_v25 }
 0x153   :  { %3849 = vrsqrt.f32 %v90_v27 }
 0x159   :  { %v3848_v32 = vpop.eup %3847 }
 0x15a   :  { %v93_v33 = vmul.f32 %v3848_v32, %v77_v6 }
 0x15c   :  { %v99_v35 = vmul.f32 %v98_v31, %v93_v33 }
 0x15d   :  { %v3850_v36 = vpop.eup %3849 }
 0x15e   :  { %v94_v37 = vmul.f32 %v3850_v36, %v78_v10  ;;  %v105_v38 = vadd.f32 %v104_v34, %v99_v35 }
 0x160   :  { %v100_v39 = vmul.f32 %v98_v31, %v94_v37  ;;  %3369 = vmatprep.mubr.msk.f32.mxu1 %vm67_vm0, %v105_v38 }
 0x162   :  { %v106_v40 = vadd.f32 %v104_v34, %v100_v39 }
 0x164   :  { %3370 = vmatmul.mubr.msk.f32.vlgmr.msra.gmra.mrb[0].mxu1 %vm67_vm0, %v106_v40 }
 0x237   :  { %v3371_v42 = vpop.f32.mrb[0].mxu1 }
 0x238   :  { %v4145_v43 = vadd.f32 %v3371_v42, %v3126_v41  ;;  %v188_v44 = vpop.f32.mrb[1].mxu1 }
 0x239   :  { %v4147_v45 = vadd.f32 %v3126_v41, %v188_v44 }
 0x23b   :  { %3376 = vmatprep.mubr.msk.f32.mxu1 %vm203_vm1, %v4147_v45  ;;  %v4153_v46 = vpack.i.bf16 %v4145_v43, %v4147_v45 }
 0x23d   :  { %3773 = vrot.lane.b32.xlu1 %v4153_v46, %s4009_s26  ;;  %3768 = vrot.lane.b32.xlu0 %v4153_v46, %s4010_s27 }
 0x241   :  { %398 = vrot.lane.b32.xlu1 %v4147_v45, %s4011_s28  ;;  %3778 = vrot.lane.b32.xlu0 %v4153_v46, %s4012_s29 }
 0x245   :  { %400 = vrot.lane.b32.xlu1 %v4145_v43, %s4011_s28  ;;  %764 = vrot.lane.b32.xlu0 %v4145_v43, %s4013_s30 }
 0x249   :  { %762 = vrot.lane.b32.xlu1 %v4147_v45, %s4013_s30 }
 0x2af   :  { %v3774_v47 = vpop.permute.xlu1 %3773  ;;  %v3769_v48 = vpop.permute.xlu0 %3768 }
 0x2b0   :  { %v3776_v49 = vunpack.i.h.bf16 %v3774_v47  ;;  %v3775_v50 = vunpack.i.l.bf16 %v3774_v47  ;;  %v3771_v51 = vunpack.i.h.bf16 %v3769_v48  ;;  %v3770_v52 = vunpack.i.l.bf16 %v3769_v48 }
 0x2b2   :  { %v3603_v54 = vpack.c.bf16 %v3771_v51, %v3770_v52  ;;  %v3613_v55 = vpack.c.bf16 %v3776_v49, %v3775_v50 }
 0x2b3   :  { %v3779_v56 = vpop.permute.xlu0 %3778  ;;  %v399_v57 = vpop.permute.xlu1 %398 }
 0x2b4   :  { %3605 = vmatprep.subr.msk.bf16.mxu1 %vm4171_vm2, %v3603_v54  ;;  %v3781_v58 = vunpack.i.h.bf16 %v3779_v56  ;;  %v3780_v59 = vunpack.i.l.bf16 %v3779_v56 }
 0x2b5   :  { %3608 = vmatpush3.bf16.xpose.msk.msra.mxu1 %vm4171_vm2, %v3603_v54 }
 0x2b6   :  { %3615 = vmatprep.subr.msk.bf16.mxu1 %vm4171_vm2, %v3613_v55  ;;  %v3623_v60 = vpack.c.bf16 %v3781_v58, %v3780_v59 }
 0x2b7   :  { %v401_v61 = vpop.permute.xlu1 %400  ;;  %v765_v63 = vpop.permute.xlu0 %764 }
 0x2bb   :  { %v763_v62 = vpop.permute.xlu1 %762 }
 0x2bc   :  { %3377 = vmatmul.mubr.msk.f32.vlgmr.msra.gmra.mrb[2].mxu1 %vm203_vm1, %v4145_v43 }
 0x2bd   :  { %3618 = vmatpush3.bf16.xpose.msk.msra.mxu1 %vm4171_vm2, %v3613_v55  ;;  %3390 = vmatprep.mubr.msk.f32.mxu1 %vm203_vm1, %v399_v57 }
 0x2be   :  { %3625 = vmatprep.subr.msk.bf16.mxu1 %vm4171_vm2, %v3623_v60 }
 0x2c4   :  { %3391 = vmatmul.mubr.msk.f32.vlgmr.msra.gmra.mrb[4].mxu1 %vm203_vm1, %v401_v61 }
 0x2c5   :  { %3628 = vmatpush3.bf16.xpose.msk.msra.mxu1 %vm4171_vm2, %v3623_v60  ;;  %3414 = vmatprep.mubr.msk.f32.mxu1 %vm203_vm1, %v763_v62 }
 0x2cc   :  { %3415 = vmatmul.mubr.msk.f32.vlgmr.msra.gmra.mrb[6].mxu1 %vm203_vm1, %v765_v63 }
 0x38f   :  { %v3378_v4 = vpop.f32.mrb[2].mxu1 }
 0x390   :  { %v284_v5 = vadd.f32 %v3378_v4, %v4193_v2  ;;  %v278_v6 = vpop.f32.mrb[3].mxu1 }
 0x391   :  { %v279_v7 = vadd.f32 %v278_v6, %v4195_v3 }
 0x392   :  { %v291_v8 = vsel %vm287_vm3, %v284_v5, -inf }
 0x393   :  { %292 = vmax.xlane.f32.xlu0 %v291_v8  ;;  %v288_v9 = vsel %vm287_vm3, %v279_v7, -inf }
 0x394   :  { %289 = vmax.xlane.f32.xlu1 %v288_v9 }
 0x397   :  { %v3392_v10 = vpop.f32.mrb[4].mxu1 }
 0x398   :  { %v480_v11 = vpop.f32.mrb[5].mxu1  ;;  %v486_v13 = vadd.f32 %v3392_v10, %v4193_v2 }
 0x399   :  { %v481_v12 = vadd.f32 %v480_v11, %v4195_v3 }
 0x39a   :  { %v492_v16 = vsel %vm287_vm3, %v486_v13, -inf }
 0x39b   :  { %v489_v14 = vsel %vm287_vm3, %v481_v12, -inf }
 0x39c   :  { %490 = vmax.xlane.f32.xlu0 %v489_v14 }
 0x39f   :  { %v3416_v15 = vpop.f32.mrb[6].mxu1 }
 0x3a0   :  { %v844_v17 = vpop.f32.mrb[7].mxu1  ;;  %493 = vmax.xlane.f32.xlu0 %v492_v16  ;;  %v850_v47 = vadd.f32 %v3416_v15, %v4193_v2 }
 0x3a1   :  { %v845_v42 = vadd.f32 %v844_v17, %v4195_v3 }
 0x3a2   :  { %v856_v48 = vsel %vm287_vm3, %v850_v47, -inf }
 0x3a3   :  { %v853_v44 = vsel %vm287_vm3, %v845_v42, -inf }
 0x420   :  { %v293_v18 = vpop.xlane.xlu0 %292 }
 0x421   :  { %v295_v19 = vsub.f32 %v284_v5, %v293_v18  ;;  %v290_v20 = vpop.xlane.xlu1 %289 }
 0x422   :  { %v294_v21 = vsub.f32 %v279_v7, %v290_v20 }
 0x423   :  { %v298_v22 = vmul.f32 1.442695, %v295_v19 }
 0x424   :  { %v296_v23 = vmul.f32 1.442695, %v294_v21 }
 0x425   :  { %3851 = vpow2.f32 %v298_v22 }
 0x426   :  { %3853 = vpow2.f32 %v296_v23 }
 0x429   :  { %v491_v24 = vpop.xlane.xlu0 %490 }
 0x42a   :  { %v495_v25 = vsub.f32 %v481_v12, %v491_v24  ;;  %v3141_v24 = vld [vmem:[%s4596_s4 + $0x8] sm:$0xff] }
 0x42c   :  { %v497_v27 = vmul.f32 1.442695, %v495_v25  ;;  %v397_v25 = vld [vmem:[%s4596_s4] sm:$0xff] }
 0x42d   :  { %v494_v31 = vpop.xlane.xlu0 %493 }
 0x42e   :  { %3855 = vpow2.f32 %v497_v27  ;;  %v496_v32 = vsub.f32 %v486_v13, %v494_v31 }
 0x42f   :  { %v3852_v33 = vpop.eup %3851 }
 0x430   :  { %v3854_v34 = vpop.eup %3853  ;;  %v499_v35 = vmul.f32 1.442695, %v496_v32  ;;  %v303_v36 = vsel %vm287_vm3, %v3852_v33, 0.0 }
 0x431   :  { %304 = vadd.xlane.f32.xlu0 %v303_v36  ;;  %v300_v37 = vsel %vm287_vm3, %v3854_v34, 0.0 }
 0x432   :  { %3857 = vpow2.f32 %v499_v35  ;;  %301 = vadd.xlane.f32.xlu1 %v300_v37 }
 0x438   :  { %v3856_v38 = vpop.eup %3855 }
 0x439   :  { %v501_v39 = vsel %vm287_vm3, %v3856_v38, 0.0 }
 0x43a   :  { %502 = vadd.xlane.f32.xlu1 %v501_v39 }
 0x43c   :  { %v3858_v40 = vpop.eup %3857 }
 0x43d   :  { %v504_v41 = vsel %vm287_vm3, %v3858_v40, 0.0 }
 0x43e   :  { %505 = vadd.xlane.f32.xlu0 %v504_v41 }
 0x44b   :  { %3783 = vrot.lane.b32.xlu1 %v4153_v46, %s4014_s11 }
 0x44f   :  { %3793 = vrot.lane.b32.xlu1 %v4153_v46, %s4015_s12 }
 0x453   :  { %1047 = vrot.lane.b32.xlu1 %v4147_v45, %s4016_s0 }
 0x454   :  { %3788 = vrot.lane.b32.xlu0 %v4153_v46, %s4017_s10 }
 0x457   :  { %1049 = vrot.lane.b32.xlu1 %v4145_v43, %s4016_s0 }
 0x473   :  { %854 = vmax.xlane.f32.xlu0 %v853_v44 }
 0x47b   :  { %857 = vmax.xlane.f32.xlu1 %v856_v48 }
 0x4be   :  { %v305_v45 = vpop.xlane.xlu0 %304 }
 0x4bf   :  { %v302_v49 = vpop.xlane.xlu1 %301 }
 0x4c0   :  { %3859 = vrcp.f32 %v302_v49 }
 0x4c1   :  { %3861 = vrcp.f32 %v305_v45 }
 0x4c7   :  { %v503_v50 = vpop.xlane.xlu1 %502 }
 0x4c8   :  { %3863 = vrcp.f32 %v503_v50 }
 0x4ca   :  { %v3860_v51 = vpop.eup %3859 }
 0x4cb   :  { %v506_v52 = vpop.xlane.xlu0 %505  ;;  %v3784_v54 = vpop.permute.xlu1 %3783  ;;  %v308_v43 = vmul.f32 %v3860_v51, %v3854_v34 }
 0x4cc   :  { %3865 = vrcp.f32 %v506_v52  ;;  %v3786_v55 = vunpack.i.h.bf16 %v3784_v54  ;;  %v3785_v56 = vunpack.i.l.bf16 %v3784_v54  ;;  %v3862_v58 = vpop.eup %3861  ;;  %v3152_v52 = vld [vmem:[%s4596_s4 + $0x10] sm:$0xff] }
 0x4cd   :  { %3383 = vmatprep.mubr.msk.f32.mxu0 %vm287_vm3, %v308_v43  ;;  %v309_v8 = vmul.f32 %v3862_v58, %v3852_v33 }
 0x4ce   :  { %v3609_v57 = vpack.c.bf16 %v3786_v55, %v3785_v56 }
 0x4cf   :  { %v3789_v59 = vpop.permute.xlu0 %3788  ;;  %v3794_v60 = vpop.permute.xlu1 %3793 }
 0x4d0   :  { %v3791_v61 = vunpack.i.h.bf16 %v3789_v59  ;;  %v3790_v62 = vunpack.i.l.bf16 %v3789_v59  ;;  %v3796_v63 = vunpack.i.h.bf16 %v3794_v60  ;;  %v3795_v4 = vunpack.i.l.bf16 %v3794_v60  ;;  %3610 = vmatprep.subr.bf16.mxu0 %v3609_v57 }
 0x4d1   :  { %3612 = vmatpush3.bf16.msra.mxu0 %v3609_v57 }
 0x4d2   :  { %v3864_v5 = vpop.eup %3863  ;;  %v3619_v6 = vpack.c.bf16 %v3791_v61, %v3790_v62  ;;  %v3633_v7 = vpack.c.bf16 %v3796_v63, %v3795_v4 }
 0x4d3   :  { %v1048_v9 = vpop.permute.xlu1 %1047  ;;  %v509_v10 = vmul.f32 %v3864_v5, %v3856_v38 }
 0x4d4   :  { %3384 = vmatmul.mubr.msk.f32.vlgmr.msra.gmra.mrb[0].mxu0 %vm287_vm3, %v309_v8  ;;  %3620 = vmatprep.subr.bf16.mxu0 %v3619_v6 }
 0x4d5   :  { %3635 = vmatprep.subr.msk.bf16.mxu1 %vm4171_vm2, %v3633_v7  ;;  %3433 = vmatprep.mubr.msk.f32.mxu1 %vm203_vm1, %v1048_v9 }
 0x4d6   :  { %v3866_v11 = vpop.eup %3865  ;;  %3622 = vmatpush3.bf16.msra.mxu0 %v3619_v6  ;;  %3397 = vmatprep.mubr.msk.f32.mxu0 %vm287_vm3, %v509_v10 }
 0x4d7   :  { %v510_v12 = vmul.f32 %v3866_v11, %v3858_v40  ;;  %3638 = vmatpush3.bf16.xpose.msk.msra.mxu1 %vm4171_vm2, %v3633_v7  ;;  %v1050_v13 = vpop.permute.xlu1 %1049  ;;  %3400 = vmatprep.subr.mxu0 %v3141_v24  ;;  %v3161_v11 = vld [vmem:[%s4596_s4 + $0x18] sm:$0xff] }
 0x4d9   :  { %3398 = vmatmul.mubr.msk.f32.vlgmr.msra.gmra.mrb[2].mxu0 %vm287_vm3, %v510_v12 }
 0x4da   :  { %3401 = vmatpush3.msra.mxu0 %v3141_v24 }
 0x4db   :  { %3405 = vmatprep.subr.mxu0 %v397_v25 }
 0x4de   :  { %3434 = vmatmul.mubr.msk.f32.vlgmr.msra.gmra.mrb[8].mxu1 %vm203_vm1, %v1050_v13 }
 0x500   :  { %v855_v14 = vpop.xlane.xlu0 %854 }
 0x501   :  { %v859_v15 = vsub.f32 %v845_v42, %v855_v14 }
 0x503   :  { %v861_v18 = vmul.f32 1.442695, %v859_v15 }
 0x508   :  { %v858_v16 = vpop.xlane.xlu1 %857 }
 0x509   :  { %v860_v17 = vsub.f32 %v850_v47, %v858_v16 }
 0x50b   :  { %v863_v19 = vmul.f32 1.442695, %v860_v17  ;;  %v1336_v17 = vsub.s32 2, %v4125_v26 }
 0x50d   :  { %3867 = vpow2.f32 %v863_v19 }
 0x50e   :  { %3869 = vpow2.f32 %v861_v18  ;;  %v1337_v18 = vrot.slane %v4131_v29, %v1336_v17 }
 0x517   :  { %v3868_v20 = vpop.eup %3867 }
 0x518   :  { %v868_v21 = vsel %vm287_vm3, %v3868_v20, 0.0  ;;  %v3870_v22 = vpop.eup %3869 }
 0x519   :  { %869 = vadd.xlane.f32.xlu0 %v868_v21  ;;  %v865_v23 = vsel %vm287_vm3, %v3870_v22, 0.0 }
 0x51d   :  { %866 = vadd.xlane.f32.xlu0 %v865_v23 }
 0x533   :  { %3798 = vrot.lane.b32.xlu0 %v4153_v46, %s4018_s16 }
 0x5a6   :  { %v870_v27 = vpop.xlane.xlu0 %869 }
 0x5a7   :  { %v3385_v31 = vpop.f32.mrb[0].mxu0 }
 0x5a8   :  { %v388_v32 = vpop.f32.mrb[1].mxu0 }
 0x5aa   :  { %v867_v33 = vpop.xlane.xlu0 %866 }
 0x5ab   :  { %3871 = vrcp.f32 %v867_v33 }
 0x5ac   :  { %3873 = vrcp.f32 %v870_v27  ;;  %v3399_v34 = vpop.f32.mrb[2].mxu0 }
 0x5ad   :  { %v589_v35 = vpop.f32.mrb[3].mxu0 }
 0x5ae   :  { %v3799_v36 = vpop.permute.xlu0 %3798  ;;  %3402 = vmatprep.mubr.msk.f32.mxu0 %vm203_vm1, %v589_v35 }
 0x5af   :  { %v3801_v37 = vunpack.i.h.bf16 %v3799_v36  ;;  %v3800_v38 = vunpack.i.l.bf16 %v3799_v36  ;;  %3403 = vmatmul.mubr.msk.f32.vlgmr.msra.gmra.mrb[4].mxu0 %vm203_vm1, %v3399_v34 }
 0x5b0   :  { %3407 = vmatprep.mubr.msk.f32.mxu0 %vm203_vm1, %v388_v32  ;;  %3406 = vmatpush3.msra.mxu0 %v397_v25 }
 0x5b1   :  { %v3629_v39 = vpack.c.bf16 %v3801_v37, %v3800_v38  ;;  %v3435_v40 = vpop.f32.mrb[8].mxu1 }
 0x5b2   :  { %v1129_v41 = vpop.f32.mrb[9].mxu1  ;;  %v1135_v47 = vadd.f32 %v3435_v40, %v4193_v2  ;;  %v1379_v40 = vld [vmem:[%s4597_s5 + $0x8] sm:$0xff] }
 0x5b3   :  { %v1130_v42 = vadd.f32 %v1129_v41, %v4195_v3  ;;  %3630 = vmatprep.subr.bf16.mxu0 %v3629_v39 }
 0x5b4   :  { %v1141_v51 = vsel %vm287_vm3, %v1135_v47, -inf }
 0x5b5   :  { %v3872_v44 = vpop.eup %3871  ;;  %v1138_v48 = vsel %vm287_vm3, %v1130_v42, -inf }
 0x5b6   :  { %v3874_v49 = vpop.eup %3873  ;;  %1139 = vmax.xlane.f32.xlu1 %v1138_v48  ;;  %v873_v45 = vmul.f32 %v3872_v44, %v3870_v22  ;;  %v1381_v44 = vld [vmem:[%s4597_s5 + $0x18] sm:$0xff]  ;;  %v1470_v48 = vld [vmem:[%s4599_s7] sm:$0xff] }
 0x5b7   :  { %3408 = vmatmul.mubr.msk.f32.vlgmr.msra.gmra.mrb[4].mxu0 %vm203_vm1, %v3385_v31  ;;  %v874_v50 = vmul.f32 %v3874_v49, %v3868_v20  ;;  %v1471_v49 = vld [vmem:[%s4599_s7 + $0x8] sm:$0xff] }
 0x5b8   :  { %3632 = vmatpush3.bf16.msra.mxu0 %v3629_v39  ;;  %3421 = vmatprep.mubr.msk.f32.mxu0 %vm287_vm3, %v873_v45  ;;  %v1378_v39 = vld [vmem:[%s4597_s5] sm:$0xff]  ;;  %v1472_v45 = vld [vmem:[%s4599_s7 + $0x10] sm:$0xff] }
 0x5b9   :  { %3424 = vmatprep.subr.mxu0 %v3152_v52  ;;  %v3643_v41 = vpack.c.bf16 %v1379_v40, %v1378_v39 }
 0x5ba   :  { %1142 = vmax.xlane.f32.xlu1 %v1141_v51  ;;  %v1473_v51 = vld [vmem:[%s4599_s7 + $0x18] sm:$0xff] }
 0x5bb   :  { %3422 = vmatmul.mubr.msk.f32.vlgmr.msra.gmra.mrb[6].mxu0 %vm287_vm3, %v874_v50  ;;  %3644 = vmatprep.subr.bf16.mxu1 %v3643_v41  ;;  %v3651_v50 = vpack.c.bf16 %v1471_v49, %v1470_v48  ;;  %v3169_v49 = vld [vmem:[%s4594_s2 + $0x20] sm:$0xff] }
 0x5bc   :  { %3425 = vmatpush3.msra.mxu0 %v3152_v52  ;;  %3646 = vmatpush3.bf16.msra.mxu1 %v3643_v41  ;;  %v3655_v52 = vpack.c.bf16 %v1473_v51, %v1472_v45  ;;  %v3170_v45 = vld [vmem:[%s4594_s2 + $0x28] sm:$0xff]  ;;  %v3171_v51 = vld [vmem:[%s4594_s2 + $0x30] sm:$0xff] }
 0x643   :  { %v1140_v54 = vpop.xlane.xlu1 %1139 }
 0x644   :  { %v1144_v43 = vsub.f32 %v1130_v42, %v1140_v54  ;;  %v1380_v42 = vld [vmem:[%s4597_s5 + $0x10] sm:$0xff]  ;;  %v1474_v54 = vld [vmem:[%s4599_s7 + $0x20] sm:$0xff] }
 0x646   :  { %v1146_v57 = vmul.f32 1.442695, %v1144_v43  ;;  %v1475_v43 = vld [vmem:[%s4599_s7 + $0x28] sm:$0xff] }
 0x647   :  { %v1143_v55 = vpop.xlane.xlu1 %1142 }
 0x648   :  { %v1145_v56 = vsub.f32 %v1135_v47, %v1143_v55  ;;  %v3647_v47 = vpack.c.bf16 %v1381_v44, %v1380_v42  ;;  %v3659_v55 = vpack.c.bf16 %v1475_v43, %v1474_v54 }
 0x64a   :  { %v1148_v58 = vmul.f32 1.442695, %v1145_v56  ;;  %3648 = vmatprep.subr.bf16.mxu1 %v3647_v47 }
 0x64b   :  { %3650 = vmatpush3.bf16.msra.mxu1 %v3647_v47 }
 0x64c   :  { %3875 = vpow2.f32 %v1148_v58 }
 0x64d   :  { %3877 = vpow2.f32 %v1146_v57 }
 0x656   :  { %v3876_v59 = vpop.eup %3875 }
 0x657   :  { %v1153_v60 = vsel %vm287_vm3, %v3876_v59, 0.0  ;;  %v3878_v61 = vpop.eup %3877 }
 0x658   :  { %1154 = vadd.xlane.f32.xlu1 %v1153_v60  ;;  %v1150_v62 = vsel %vm287_vm3, %v3878_v61, 0.0 }
 0x65c   :  { %1151 = vadd.xlane.f32.xlu1 %v1150_v62  ;;  %v1368_v62 = vsub.s32 3, %v4125_v26 }
 0x66d   :  { %3803 = vrot.lane.b32.xlu1 %v4153_v46, %s4019_s21 }
 0x68e   :  { %v3423_v63 = vpop.f32.mrb[6].mxu0 }
 0x68f   :  { %v953_v4 = vpop.f32.mrb[7].mxu0 }
 0x690   :  { %3426 = vmatprep.mubr.msk.f32.mxu0 %vm203_vm1, %v953_v4  ;;  %v1369_v4 = vrot.slane %v4131_v29, %v1368_v62 }
 0x691   :  { %3427 = vmatmul.mubr.msk.f32.vlgmr.msra.gmra.mrb[4].mxu0 %vm203_vm1, %v3423_v63  ;;  %v1374_v63 = vsub.s32 4, %v4125_v26 }
 0x6e5   :  { %v1155_v5 = vpop.xlane.xlu1 %1154 }
 0x6e6   :  { %3879 = vrcp.f32 %v1155_v5 }
 0x6e9   :  { %v1152_v6 = vpop.xlane.xlu1 %1151 }
 0x6ea   :  { %3881 = vrcp.f32 %v1152_v6 }
 0x6ed   :  { %v3804_v7 = vpop.permute.xlu1 %3803 }
 0x6ee   :  { %v3806_v8 = vunpack.i.h.bf16 %v3804_v7  ;;  %v3805_v9 = vunpack.i.l.bf16 %v3804_v7  ;;  %v1375_v7 = vrot.slane %v4131_v29, %v1374_v63 }
 0x6f0   :  { %v3639_v10 = vpack.c.bf16 %v3806_v8, %v3805_v9  ;;  %v3880_v46 = vpop.eup %3879 }
 0x6f1   :  { %v1159_v14 = vmul.f32 %v3880_v46, %v3876_v59 }
 0x6f2   :  { %3640 = vmatprep.subr.bf16.mxu0 %v3639_v10 }
 0x6f3   :  { %3642 = vmatpush3.bf16.msra.mxu0 %v3639_v10 }
 0x6f4   :  { %v3882_v12 = vpop.eup %3881  ;;  %3443 = vmatprep.subr.mxu0 %v3161_v11 }
 0x6f5   :  { %v1158_v13 = vmul.f32 %v3882_v12, %v3878_v61 }
 0x6f7   :  { %3440 = vmatprep.mubr.msk.f32.mxu0 %vm287_vm3, %v1158_v13  ;;  %v1476_v13 = vld [vmem:[%s4599_s7 + $0x30] sm:$0xff] }
 0x6f8   :  { %3441 = vmatmul.mubr.msk.f32.vlgmr.msra.gmra.mrb[8].mxu0 %vm287_vm3, %v1159_v14  ;;  %v1477_v14 = vld [vmem:[%s4599_s7 + $0x38] sm:$0xff] }
 0x6f9   :  { %3444 = vmatpush3.msra.mxu0 %v3161_v11 }
 0x6fa   :  { %3652 = vmatprep.subr.bf16.mxu0 %v3651_v50 }
 0x7cb   :  { %v3442_v15 = vpop.f32.mrb[8].mxu0 }
 0x7cc   :  { %v1238_v16 = vpop.f32.mrb[9].mxu0 }
 0x7cd   :  { %3445 = vmatprep.mubr.msk.f32.mxu0 %vm203_vm1, %v1238_v16  ;;  %v3164_v16 = vld [vmem:[%s4598_s6] ss:$0 sm:$0xff] }
 0x7ce   :  { %3446 = vmatmul.mubr.msk.f32.vlgmr.msra.gmra.mrb[4].mxu0 %vm203_vm1, %v3442_v15  ;;  %v3663_v15 = vpack.c.bf16 %v1477_v14, %v1476_v13  ;;  %v3173_v13 = vld [vmem:[%s4595_s3 + $0x1] ss:$0 sm:$0xff] }
 0x7cf   :  { %3654 = vmatpush3.bf16.msra.mxu0 %v3651_v50  ;;  %v3667_v50 = vpack.c.bf16 %v3170_v45, %v3169_v49 }
 0x7d0   :  { %3656 = vmatprep.subr.bf16.mxu0 %v3655_v52 }
 0x7d1   :  { %3668 = vmatprep.subr.bf16.mxu1 %v3667_v50 }
 0x7d3   :  { %3658 = vmatpush3.bf16.msra.mxu0 %v3655_v52  ;;  %v3172_v52 = vld [vmem:[%s4594_s2 + $0x38] sm:$0xff] }
 0x7d4   :  { %3660 = vmatprep.subr.bf16.mxu0 %v3659_v55  ;;  %v3671_v54 = vpack.c.bf16 %v3172_v52, %v3171_v51 }
 0x7d7   :  { %3662 = vmatpush3.bf16.msra.mxu0 %v3659_v55 }
 0x7d8   :  { %3664 = vmatprep.subr.bf16.mxu0 %v3663_v15 }
 0x7db   :  { %3666 = vmatpush3.bf16.msra.mxu0 %v3663_v15 }
 0x8a1   :  { %v3447_v19 = vpop.f32.mrb[4].mxu0 }
 0x8a2   :  { %v1333_v20 = vadd.f32 %v3447_v19, %v4103_v1  ;;  %v1321_v21 = vpop.f32.mrb[5].mxu0 }
 0x8a3   :  { %v1332_v22 = vadd.f32 %v1321_v21, %v4101_v0 }
 0x8a4   :  { %v4275_v23 = vadd.f32 %v1337_v18, %v1333_v20 }
 0x8a5   :  { %v4277_v24 = vadd.f32 %v1337_v18, %v1332_v22 }
 0x8a6   :  { %v1343_v25 = vsel %vm67_vm0, %v4275_v23, 0.0 }
 0x8a7   :  { %1344 = vadd.xlane.f32.xlu1 %v1343_v25  ;;  %v1340_v27 = vsel %vm67_vm0, %v4277_v24, 0.0 }
 0x8a8   :  { %1341 = vadd.xlane.f32.xlu0 %v1340_v27  ;;  %v1564_v27 = vsub.s32 5, %v4125_v26 }
 0x934   :  { %v1345_v31 = vpop.xlane.xlu1 %1344 }
 0x935   :  { %v1347_v32 = vmul.f32 0.03125, %v1345_v31  ;;  %v1342_v33 = vpop.xlane.xlu0 %1341 }
 0x936   :  { %v1346_v34 = vmul.f32 0.03125, %v1342_v33 }
 0x937   :  { %v1349_v1 = vsub.f32 %v4275_v23, %v1347_v32  ;;  %v1565_v32 = vrot.slane %v4131_v29, %v1564_v27 }
 0x938   :  { %v1348_v0 = vsub.f32 %v4277_v24, %v1346_v34 }
 0x939   :  { %v1351_v37 = vmul.f32 %v1349_v1, %v1349_v1 }
 0x93a   :  { %v1350_v35 = vmul.f32 %v1348_v0, %v1348_v0 }
 0x93b   :  { %v1355_v38 = vsel %vm67_vm0, %v1351_v37, 0.0 }
 0x93c   :  { %v1352_v36 = vsel %vm67_vm0, %v1350_v35, 0.0 }
 0x93d   :  { %1353 = vadd.xlane.f32.xlu0 %v1352_v36 }
 0x941   :  { %1356 = vadd.xlane.f32.xlu0 %v1355_v38 }
 0x9ca   :  { %v1354_v56 = vpop.xlane.xlu0 %1353 }
 0x9cb   :  { %v1358_v57 = vmul.f32 0.03125, %v1354_v56 }
 0x9cd   :  { %v1360_v58 = vadd.f32 1e-05, %v1358_v57 }
 0x9ce   :  { %v1357_v59 = vpop.xlane.xlu0 %1356 }
 0x9cf   :  { %3883 = vrsqrt.f32 %v1360_v58  ;;  %v1359_v60 = vmul.f32 0.03125, %v1357_v59 }
 0x9d1   :  { %v1361_v61 = vadd.f32 1e-05, %v1359_v60  ;;  %v1596_v60 = vsub.s32 6, %v4125_v26 }
 0x9d3   :  { %3885 = vrsqrt.f32 %v1361_v61  ;;  %v1602_v61 = vsub.s32 7, %v4125_v26 }
 0x9d9   :  { %v3884_v5 = vpop.eup %3883 }
 0x9da   :  { %v1364_v6 = vmul.f32 %v3884_v5, %v1348_v0 }
 0x9dc   :  { %v1370_v8 = vmul.f32 %v1369_v4, %v1364_v6 }
 0x9dd   :  { %v3886_v9 = vpop.eup %3885 }
 0x9de   :  { %v1365_v10 = vmul.f32 %v3886_v9, %v1349_v1  ;;  %v1376_v11 = vadd.f32 %v1375_v7, %v1370_v8 }
 0x9e0   :  { %v1371_v46 = vmul.f32 %v1369_v4, %v1365_v10  ;;  %3456 = vmatprep.mubr.msk.f32.mxu1 %vm67_vm0, %v1376_v11  ;;  %v1597_v4 = vrot.slane %v4131_v29, %v1596_v60 }
 0x9e2   :  { %v1377_v12 = vadd.f32 %v1375_v7, %v1371_v46  ;;  %v1603_v7 = vrot.slane %v4131_v29, %v1602_v61 }
 0x9e4   :  { %3457 = vmatmul.mubr.msk.f32.vlgmr.msra.gmra.mrb[10].mxu1 %vm67_vm0, %v1377_v12 }
 0x9e5   :  { %3670 = vmatpush3.bf16.msra.mxu1 %v3667_v50 }
 0x9e6   :  { %3672 = vmatprep.subr.bf16.mxu1 %v3671_v54 }
 0x9e9   :  { %3674 = vmatpush3.bf16.msra.mxu1 %v3671_v54 }
 0xab7   :  { %v3458_v18 = vpop.f32.mrb[10].mxu1 }
 0xab8   :  { %v1465_v19 = vadd.f32 %v3458_v18, %v3164_v16  ;;  %v1459_v20 = vpop.f32.mrb[11].mxu1 }
 0xab9   :  { %v1460_v21 = vadd.f32 %v3164_v16, %v1459_v20 }
 0xaba   :  { %v1469_v25 = vmax.f32 %v1465_v19, 0.0 }
 0xabb   :  { %v1468_v22 = vmax.f32 %v1460_v21, 0.0 }
 0xabd   :  { %3475 = vmatprep.mubr.msk.f32.mxu0 %vm1478_vm4, %v1468_v22 }
 0xabe   :  { %3476 = vmatmul.mubr.msk.f32.vlgmr.msra.gmra.mrb[10].mxu0 %vm1478_vm4, %v1469_v25 }
 0xb91   :  { %v3477_v31 = vpop.f32.mrb[10].mxu0 }
 0xb92   :  { %v1551_v33 = vpop.f32.mrb[11].mxu0  ;;  %v1561_v34 = vadd.f32 %v3477_v31, %v4275_v23 }
 0xb93   :  { %v1560_v1 = vadd.f32 %v1551_v33, %v4277_v24 }
 0xb94   :  { %v4346_v35 = vadd.f32 %v1565_v32, %v1561_v34 }
 0xb95   :  { %v4344_v0 = vadd.f32 %v1565_v32, %v1560_v1 }
 0xb96   :  { %v1571_v37 = vsel %vm67_vm0, %v4346_v35, 0.0 }
 0xb97   :  { %v1568_v36 = vsel %vm67_vm0, %v4344_v0, 0.0 }
 0xb98   :  { %1569 = vadd.xlane.f32.xlu0 %v1568_v36 }
 0xb9c   :  { %1572 = vadd.xlane.f32.xlu0 %v1571_v37 }
 0xc25   :  { %v1570_v38 = vpop.xlane.xlu0 %1569 }
 0xc26   :  { %v1574_v39 = vmul.f32 0.03125, %v1570_v38 }
 0xc28   :  { %v1576_v40 = vsub.f32 %v4344_v0, %v1574_v39 }
 0xc29   :  { %v1573_v41 = vpop.xlane.xlu0 %1572 }
 0xc2a   :  { %v1575_v23 = vmul.f32 0.03125, %v1573_v41  ;;  %v1578_v42 = vmul.f32 %v1576_v40, %v1576_v40 }
 0xc2c   :  { %v1577_v24 = vsub.f32 %v4346_v35, %v1575_v23  ;;  %v1580_v44 = vsel %vm67_vm0, %v1578_v42, 0.0 }
 0xc2d   :  { %1581 = vadd.xlane.f32.xlu0 %v1580_v44 }
 0xc2e   :  { %v1579_v47 = vmul.f32 %v1577_v24, %v1577_v24 }
 0xc30   :  { %v1583_v48 = vsel %vm67_vm0, %v1579_v47, 0.0 }
 0xc31   :  { %1584 = vadd.xlane.f32.xlu1 %v1583_v48 }
 0xcba   :  { %v1582_v43 = vpop.xlane.xlu0 %1581 }
 0xcbb   :  { %v1586_v55 = vmul.f32 0.03125, %v1582_v43 }
 0xcbd   :  { %v1588_v56 = vadd.f32 1e-05, %v1586_v55 }
 0xcbe   :  { %v1585_v57 = vpop.xlane.xlu1 %1584 }
 0xcbf   :  { %3887 = vrsqrt.f32 %v1588_v56  ;;  %v1587_v58 = vmul.f32 0.03125, %v1585_v57 }
 0xcc1   :  { %v1589_v59 = vadd.f32 1e-05, %v1587_v58 }
 0xcc3   :  { %3889 = vrsqrt.f32 %v1589_v59 }
 0xcc9   :  { %v3888_v5 = vpop.eup %3887 }
 0xcca   :  { %v1592_v6 = vmul.f32 %v3888_v5, %v1576_v40 }
 0xccc   :  { %v1598_v8 = vmul.f32 %v1597_v4, %v1592_v6 }
 0xccd   :  { %v3890_v9 = vpop.eup %3889 }
 0xcce   :  { %v1593_v10 = vmul.f32 %v3890_v9, %v1577_v24  ;;  %v1604_v11 = vadd.f32 %v1603_v7, %v1598_v8 }
 0xcd0   :  { %v1599_v46 = vmul.f32 %v1597_v4, %v1593_v10  ;;  %3486 = vmatprep.mubr.msk.f32.mxu1 %vm67_vm0, %v1604_v11 }
 0xcd2   :  { %v1605_v12 = vadd.f32 %v1603_v7, %v1599_v46 }
 0xcd4   :  { %3487 = vmatmul.mubr.msk.f32.vlgmr.msra.gmra.mrb[12].mxu1 %vm67_vm0, %v1605_v12 }
 0xda7   :  { %v3488_v14 = vpop.f32.mrb[12].mxu1 }
 0xda8   :  { %v4377_v15 = vadd.f32 %v3488_v14, %v3173_v13  ;;  %v1688_v16 = vpop.f32.mrb[13].mxu1 }
 0xda9   :  { %v4379_v18 = vadd.f32 %v3173_v13, %v1688_v16 }
 0xdab   :  { %3493 = vmatprep.mubr.msk.f32.mxu1 %vm203_vm1, %v4379_v18  ;;  %v4385_v29 = vpack.i.bf16 %v4377_v15, %v4379_v18 }
 0xdad   :  { %3813 = vrot.lane.b32.xlu1 %v4385_v29, %s4009_s26  ;;  %3808 = vrot.lane.b32.xlu0 %v4385_v29, %s4010_s27 }
 0xdb1   :  { %1897 = vrot.lane.b32.xlu1 %v4379_v18, %s4011_s28  ;;  %3818 = vrot.lane.b32.xlu0 %v4385_v29, %s4012_s29 }
 0xdb5   :  { %1899 = vrot.lane.b32.xlu1 %v4377_v15, %s4011_s28  ;;  %2263 = vrot.lane.b32.xlu0 %v4377_v15, %s4013_s30 }
 0xdb9   :  { %2261 = vrot.lane.b32.xlu1 %v4379_v18, %s4013_s30 }
 0xe1f   :  { %v3814_v19 = vpop.permute.xlu1 %3813  ;;  %v3809_v20 = vpop.permute.xlu0 %3808 }
 0xe20   :  { %v3816_v21 = vunpack.i.h.bf16 %v3814_v19  ;;  %v3815_v22 = vunpack.i.l.bf16 %v3814_v19  ;;  %v3811_v25 = vunpack.i.h.bf16 %v3809_v20  ;;  %v3810_v31 = vunpack.i.l.bf16 %v3809_v20 }
 0xe22   :  { %v3675_v32 = vpack.c.bf16 %v3811_v25, %v3810_v31  ;;  %v3685_v33 = vpack.c.bf16 %v3816_v21, %v3815_v22 }
 0xe23   :  { %v3819_v34 = vpop.permute.xlu0 %3818  ;;  %v1898_v1 = vpop.permute.xlu1 %1897 }
 0xe24   :  { %3677 = vmatprep.subr.msk.bf16.mxu1 %vm4171_vm2, %v3675_v32  ;;  %v3821_v36 = vunpack.i.h.bf16 %v3819_v34  ;;  %v3820_v37 = vunpack.i.l.bf16 %v3819_v34 }
 0xe25   :  { %3680 = vmatpush3.bf16.xpose.msk.msra.mxu1 %vm4171_vm2, %v3675_v32 }
 0xe26   :  { %3687 = vmatprep.subr.msk.bf16.mxu1 %vm4171_vm2, %v3685_v33  ;;  %v3695_v38 = vpack.c.bf16 %v3821_v36, %v3820_v37 }
 0xe27   :  { %v1900_v39 = vpop.permute.xlu1 %1899  ;;  %v2264_v41 = vpop.permute.xlu0 %2263 }
 0xe2b   :  { %v2262_v40 = vpop.permute.xlu1 %2261 }
 0xe2c   :  { %3494 = vmatmul.mubr.msk.f32.vlgmr.msra.gmra.mrb[14].mxu1 %vm203_vm1, %v4377_v15 }
 0xe2d   :  { %3690 = vmatpush3.bf16.xpose.msk.msra.mxu1 %vm4171_vm2, %v3685_v33  ;;  %3507 = vmatprep.mubr.msk.f32.mxu1 %vm203_vm1, %v1898_v1 }
 0xe2e   :  { %3697 = vmatprep.subr.msk.bf16.mxu1 %vm4171_vm2, %v3695_v38 }
 0xe34   :  { %3508 = vmatmul.mubr.msk.f32.vlgmr.msra.gmra.mrb[16].mxu1 %vm203_vm1, %v1900_v39 }
 0xe35   :  { %3700 = vmatpush3.bf16.xpose.msk.msra.mxu1 %vm4171_vm2, %v3695_v38  ;;  %3531 = vmatprep.mubr.msk.f32.mxu1 %vm203_vm1, %v2262_v40 }
 0xe3c   :  { %3532 = vmatmul.mubr.msk.f32.vlgmr.msra.gmra.mrb[18].mxu1 %vm203_vm1, %v2264_v41 }
 0xeff   :  { %v3495_v23 = vpop.f32.mrb[14].mxu1 }
 0xf00   :  { %v1783_v42 = vadd.f32 %v3495_v23, %v4193_v2  ;;  %v1777_v24 = vpop.f32.mrb[15].mxu1 }
 0xf01   :  { %v1778_v44 = vadd.f32 %v1777_v24, %v4195_v3 }
 0xf02   :  { %v1789_v47 = vsel %vm287_vm3, %v1783_v42, -inf }
 0xf03   :  { %1790 = vmax.xlane.f32.xlu0 %v1789_v47  ;;  %v1786_v48 = vsel %vm287_vm3, %v1778_v44, -inf }
 0xf04   :  { %1787 = vmax.xlane.f32.xlu1 %v1786_v48 }
 0xf07   :  { %v3509_v49 = vpop.f32.mrb[16].mxu1 }
 0xf08   :  { %v1979_v45 = vpop.f32.mrb[17].mxu1  ;;  %v1985_v51 = vadd.f32 %v3509_v49, %v4193_v2 }
 0xf09   :  { %v1980_v50 = vadd.f32 %v1979_v45, %v4195_v3 }
 0xf0a   :  { %v1991_v43 = vsel %vm287_vm3, %v1985_v51, -inf }
 0xf0b   :  { %v1988_v52 = vsel %vm287_vm3, %v1980_v50, -inf }
 0xf0c   :  { %1989 = vmax.xlane.f32.xlu0 %v1988_v52 }
 0xf0f   :  { %v3533_v54 = vpop.f32.mrb[18].mxu1 }
 0xf10   :  { %v2343_v55 = vpop.f32.mrb[19].mxu1  ;;  %1992 = vmax.xlane.f32.xlu0 %v1991_v43  ;;  %v2349_v22 = vadd.f32 %v3533_v54, %v4193_v2 }
 0xf11   :  { %v2344_v20 = vadd.f32 %v2343_v55, %v4195_v3 }
 0xf12   :  { %v2355_v25 = vsel %vm287_vm3, %v2349_v22, -inf }
 0xf13   :  { %v2352_v21 = vsel %vm287_vm3, %v2344_v20, -inf }
 0xf90   :  { %v1791_v56 = vpop.xlane.xlu0 %1790 }
 0xf91   :  { %v1793_v57 = vsub.f32 %v1783_v42, %v1791_v56  ;;  %v1788_v58 = vpop.xlane.xlu1 %1787 }
 0xf92   :  { %v1792_v59 = vsub.f32 %v1778_v44, %v1788_v58 }
 0xf93   :  { %v1796_v60 = vmul.f32 1.442695, %v1793_v57 }
 0xf94   :  { %v1794_v61 = vmul.f32 1.442695, %v1792_v59 }
 0xf95   :  { %3891 = vpow2.f32 %v1796_v60 }
 0xf96   :  { %3893 = vpow2.f32 %v1794_v61 }
 0xf99   :  { %v1990_v4 = vpop.xlane.xlu0 %1989 }
 0xf9a   :  { %v1994_v5 = vsub.f32 %v1980_v50, %v1990_v4  ;;  %v3189_v4 = vld [vmem:[%s4596_s4 + $0x28] sm:$0xff] }
 0xf9c   :  { %v1996_v6 = vmul.f32 1.442695, %v1994_v5  ;;  %v3182_v5 = vld [vmem:[%s4596_s4 + $0x20] sm:$0xff] }
 0xf9d   :  { %v1993_v7 = vpop.xlane.xlu0 %1992 }
 0xf9e   :  { %3895 = vpow2.f32 %v1996_v6  ;;  %v1995_v8 = vsub.f32 %v1985_v51, %v1993_v7 }
 0xf9f   :  { %v3892_v9 = vpop.eup %3891 }
 0xfa0   :  { %v3894_v10 = vpop.eup %3893  ;;  %v1998_v11 = vmul.f32 1.442695, %v1995_v8  ;;  %v1801_v46 = vsel %vm287_vm3, %v3892_v9, 0.0 }
 0xfa1   :  { %1802 = vadd.xlane.f32.xlu0 %v1801_v46  ;;  %v1798_v12 = vsel %vm287_vm3, %v3894_v10, 0.0 }
 0xfa2   :  { %3897 = vpow2.f32 %v1998_v11  ;;  %1799 = vadd.xlane.f32.xlu1 %v1798_v12 }
 0xfa8   :  { %v3896_v13 = vpop.eup %3895 }
 0xfa9   :  { %v2000_v14 = vsel %vm287_vm3, %v3896_v13, 0.0 }
 0xfaa   :  { %2001 = vadd.xlane.f32.xlu1 %v2000_v14 }
 0xfac   :  { %v3898_v16 = vpop.eup %3897 }
 0xfad   :  { %v2003_v19 = vsel %vm287_vm3, %v3898_v16, 0.0 }
 0xfae   :  { %2004 = vadd.xlane.f32.xlu0 %v2003_v19 }
 0xfbb   :  { %3823 = vrot.lane.b32.xlu1 %v4385_v29, %s4014_s11 }
 0xfbf   :  { %3833 = vrot.lane.b32.xlu1 %v4385_v29, %s4015_s12 }
 0xfc3   :  { %2546 = vrot.lane.b32.xlu1 %v4379_v18, %s4016_s0 }
 0xfc4   :  { %3828 = vrot.lane.b32.xlu0 %v4385_v29, %s4017_s10 }
 0xfc7   :  { %2548 = vrot.lane.b32.xlu1 %v4377_v15, %s4016_s0 }
 0xfe3   :  { %2353 = vmax.xlane.f32.xlu0 %v2352_v21 }
 0xfeb   :  { %2356 = vmax.xlane.f32.xlu1 %v2355_v25  ;;  %v3932_v25 = vld [vmem:[#allocation5 + $0x8] sm:$0xff] }
0x102e   :  { %v1803_v32 = vpop.xlane.xlu0 %1802 }
0x102f   :  { %v1800_v31 = vpop.xlane.xlu1 %1799 }
0x1030   :  { %3899 = vrcp.f32 %v1800_v31 }
0x1031   :  { %3901 = vrcp.f32 %v1803_v32 }
0x1037   :  { %v2002_v18 = vpop.xlane.xlu1 %2001 }
0x1038   :  { %3903 = vrcp.f32 %v2002_v18 }
0x103a   :  { %v3900_v33 = vpop.eup %3899 }
0x103b   :  { %v2005_v34 = vpop.xlane.xlu0 %2004  ;;  %v3824_v1 = vpop.permute.xlu1 %3823  ;;  %v1806_v15 = vmul.f32 %v3900_v33, %v3894_v10 }
0x103c   :  { %3905 = vrcp.f32 %v2005_v34  ;;  %v3826_v3 = vunpack.i.h.bf16 %v3824_v1  ;;  %v3825_v36 = vunpack.i.l.bf16 %v3824_v1  ;;  %v3902_v2 = vpop.eup %3901 }
0x103d   :  { %3500 = vmatprep.mubr.msk.f32.mxu0 %vm287_vm3, %v1806_v15  ;;  %v1807_v44 = vmul.f32 %v3902_v2, %v3892_v9  ;;  %v3200_v15 = vld [vmem:[%s4596_s4 + $0x30] sm:$0xff] }
0x103e   :  { %v3681_v37 = vpack.c.bf16 %v3826_v3, %v3825_v36 }
0x103f   :  { %v3829_v38 = vpop.permute.xlu0 %3828  ;;  %v3834_v39 = vpop.permute.xlu1 %3833 }
0x1040   :  { %v3831_v40 = vunpack.i.h.bf16 %v3829_v38  ;;  %v3830_v41 = vunpack.i.l.bf16 %v3829_v38  ;;  %v3836_v23 = vunpack.i.h.bf16 %v3834_v39  ;;  %v3835_v42 = vunpack.i.l.bf16 %v3834_v39  ;;  %3682 = vmatprep.subr.bf16.mxu0 %v3681_v37 }
0x1041   :  { %3684 = vmatpush3.bf16.msra.mxu0 %v3681_v37 }
0x1042   :  { %v3904_v24 = vpop.eup %3903  ;;  %v3691_v47 = vpack.c.bf16 %v3831_v40, %v3830_v41  ;;  %v3705_v48 = vpack.c.bf16 %v3836_v23, %v3835_v42 }
0x1043   :  { %v2547_v49 = vpop.permute.xlu1 %2546  ;;  %v2008_v45 = vmul.f32 %v3904_v24, %v3896_v13 }
0x1044   :  { %3501 = vmatmul.mubr.msk.f32.vlgmr.msra.gmra.mrb[12].mxu0 %vm287_vm3, %v1807_v44  ;;  %3692 = vmatprep.subr.bf16.mxu0 %v3691_v47 }
0x1045   :  { %3707 = vmatprep.subr.msk.bf16.mxu1 %vm4171_vm2, %v3705_v48  ;;  %3550 = vmatprep.mubr.msk.f32.mxu1 %vm203_vm1, %v2547_v49 }
0x1046   :  { %v3906_v50 = vpop.eup %3905  ;;  %3694 = vmatpush3.bf16.msra.mxu0 %v3691_v47  ;;  %3514 = vmatprep.mubr.msk.f32.mxu0 %vm287_vm3, %v2008_v45 }
0x1047   :  { %v2009_v51 = vmul.f32 %v3906_v50, %v3898_v16  ;;  %3710 = vmatpush3.bf16.xpose.msk.msra.mxu1 %vm4171_vm2, %v3705_v48  ;;  %v2549_v52 = vpop.permute.xlu1 %2548  ;;  %3517 = vmatprep.subr.mxu0 %v3189_v4 }
0x1049   :  { %3515 = vmatmul.mubr.msk.f32.vlgmr.msra.gmra.mrb[14].mxu0 %vm287_vm3, %v2009_v51 }
0x104a   :  { %3518 = vmatpush3.msra.mxu0 %v3189_v4 }
0x104b   :  { %3522 = vmatprep.subr.mxu0 %v3182_v5 }
0x104e   :  { %3551 = vmatmul.mubr.msk.f32.vlgmr.msra.gmra.mrb[20].mxu1 %vm203_vm1, %v2549_v52  ;;  %v3209_v52 = vld [vmem:[%s4596_s4 + $0x38] sm:$0xff] }
0x1070   :  { %v2354_v54 = vpop.xlane.xlu0 %2353 }
0x1071   :  { %v2358_v43 = vsub.f32 %v2344_v20, %v2354_v54  ;;  %v3931_v20 = vld [vmem:[#allocation5] sm:$0xff] }
0x1073   :  { %v2360_v57 = vmul.f32 1.442695, %v2358_v43 }
0x1078   :  { %v2357_v55 = vpop.xlane.xlu1 %2356 }
0x1079   :  { %v2359_v56 = vsub.f32 %v2349_v22, %v2357_v55 }
0x107b   :  { %v2362_v58 = vmul.f32 1.442695, %v2359_v56 }
0x107d   :  { %3907 = vpow2.f32 %v2362_v58  ;;  %v4492_v58 = vld [vmem:[%s4600_s8 + $0x8] sm:$0x3f] }
0x107e   :  { %3909 = vpow2.f32 %v2360_v57 }
0x1087   :  { %v3908_v59 = vpop.eup %3907 }
0x1088   :  { %v2367_v60 = vsel %vm287_vm3, %v3908_v59, 0.0  ;;  %v3910_v61 = vpop.eup %3909 }
0x1089   :  { %2368 = vadd.xlane.f32.xlu0 %v2367_v60  ;;  %v2364_v53 = vsel %vm287_vm3, %v3910_v61, 0.0 }
0x108d   :  { %2365 = vadd.xlane.f32.xlu0 %v2364_v53 }
0x10a3   :  { %3838 = vrot.lane.b32.xlu0 %v4385_v29, %s4018_s16 }
0x1116   :  { %v2369_v6 = vpop.xlane.xlu0 %2368 }
0x1117   :  { %v3502_v7 = vpop.f32.mrb[12].mxu0 }
0x1118   :  { %v1886_v8 = vpop.f32.mrb[13].mxu0 }
0x111a   :  { %v2366_v9 = vpop.xlane.xlu0 %2365 }
0x111b   :  { %3911 = vrcp.f32 %v2366_v9 }
0x111c   :  { %3913 = vrcp.f32 %v2369_v6  ;;  %v3516_v10 = vpop.f32.mrb[14].mxu0 }
0x111d   :  { %v2088_v11 = vpop.f32.mrb[15].mxu0 }
0x111e   :  { %v3839_v46 = vpop.permute.xlu0 %3838  ;;  %3519 = vmatprep.mubr.msk.f32.mxu0 %vm203_vm1, %v2088_v11 }
0x111f   :  { %v3841_v12 = vunpack.i.h.bf16 %v3839_v46  ;;  %v3840_v13 = vunpack.i.l.bf16 %v3839_v46  ;;  %3520 = vmatmul.mubr.msk.f32.vlgmr.msra.gmra.mrb[16].mxu0 %vm203_vm1, %v3516_v10 }
0x1120   :  { %3524 = vmatprep.mubr.msk.f32.mxu0 %vm203_vm1, %v1886_v8  ;;  %3523 = vmatpush3.msra.mxu0 %v3182_v5 }
0x1121   :  { %v3701_v14 = vpack.c.bf16 %v3841_v12, %v3840_v13  ;;  %v3552_v16 = vpop.f32.mrb[20].mxu1 }
0x1122   :  { %v2628_v19 = vpop.f32.mrb[21].mxu1  ;;  %v2634_v31 = vadd.f32 %v3932_v25, %v3552_v16  ;;  %v3212_v16 = vld [vmem:[%s4597_s5 + $0x20] sm:$0xff] }
0x1123   :  { %v2629_v21 = vadd.f32 %v3931_v20, %v2628_v19  ;;  %3702 = vmatprep.subr.bf16.mxu0 %v3701_v14  ;;  %v3213_v19 = vld [vmem:[%s4597_s5 + $0x28] sm:$0xff] }
0x1124   :  { %v2640_v1 = vsel %vm287_vm3, %v2634_v31, -inf  ;;  %v3715_v20 = vpack.c.bf16 %v3213_v19, %v3212_v16 }
0x1125   :  { %v3912_v22 = vpop.eup %3911  ;;  %v2637_v32 = vsel %vm287_vm3, %v2629_v21, -inf }
0x1126   :  { %v3914_v18 = vpop.eup %3913  ;;  %2638 = vmax.xlane.f32.xlu1 %v2637_v32  ;;  %v2372_v33 = vmul.f32 %v3912_v22, %v3910_v61  ;;  %3716 = vmatprep.subr.bf16.mxu1 %v3715_v20  ;;  %v3215_v22 = vld [vmem:[%s4597_s5 + $0x38] sm:$0xff]  ;;  %v3220_v32 = vld [vmem:[%s4599_s7 + $0x48] sm:$0xff] }
0x1127   :  { %3525 = vmatmul.mubr.msk.f32.vlgmr.msra.gmra.mrb[16].mxu0 %vm203_vm1, %v3502_v7  ;;  %v2373_v34 = vmul.f32 %v3914_v18, %v3908_v59  ;;  %v2836_v59 = vrot.slane %v4492_v58, %v97_v28  ;;  %3718 = vmatpush3.bf16.msra.mxu1 %v3715_v20  ;;  %v3221_v18 = vld [vmem:[%s4599_s7 + $0x50] sm:$0xff] }
0x1128   :  { %3704 = vmatpush3.bf16.msra.mxu0 %v3701_v14  ;;  %3538 = vmatprep.mubr.msk.f32.mxu0 %vm287_vm3, %v2372_v33 }
0x1129   :  { %3541 = vmatprep.subr.mxu0 %v3200_v15 }
0x112a   :  { %2641 = vmax.xlane.f32.xlu1 %v2640_v1 }
0x112b   :  { %3539 = vmatmul.mubr.msk.f32.vlgmr.msra.gmra.mrb[18].mxu0 %vm287_vm3, %v2373_v34  ;;  %v3222_v34 = vld [vmem:[%s4599_s7 + $0x58] sm:$0xff] }
0x112c   :  { %3542 = vmatpush3.msra.mxu0 %v3200_v15  ;;  %v3727_v1 = vpack.c.bf16 %v3222_v34, %v3221_v18  ;;  %v3223_v15 = vld [vmem:[%s4599_s7 + $0x60] sm:$0xff]  ;;  %v3103_v18 = vrot.slane %v4492_v58, %v1564_v27 }
0x11b3   :  { %v2639_v3 = vpop.xlane.xlu1 %2638 }
0x11b4   :  { %v2643_v36 = vsub.f32 %v2629_v21, %v2639_v3  ;;  %v3214_v21 = vld [vmem:[%s4597_s5 + $0x30] sm:$0xff]  ;;  %v3224_v3 = vld [vmem:[%s4599_s7 + $0x68] sm:$0xff] }
0x11b5   :  { %v3719_v25 = vpack.c.bf16 %v3215_v22, %v3214_v21 }
0x11b6   :  { %v2645_v38 = vmul.f32 1.442695, %v2643_v36  ;;  %v3731_v36 = vpack.c.bf16 %v3224_v3, %v3223_v15 }
0x11b7   :  { %v2642_v37 = vpop.xlane.xlu1 %2641  ;;  %3720 = vmatprep.subr.bf16.mxu1 %v3719_v25 }
0x11b8   :  { %v2644_v2 = vsub.f32 %v2634_v31, %v2642_v37  ;;  %3722 = vmatpush3.bf16.msra.mxu1 %v3719_v25  ;;  %v3219_v31 = vld [vmem:[%s4599_s7 + $0x40] sm:$0xff] }
0x11b9   :  { %v3723_v33 = vpack.c.bf16 %v3220_v32, %v3219_v31  ;;  %v3097_v31 = vrot.slane %v4492_v58, %v1374_v63 }
0x11ba   :  { %v2647_v39 = vmul.f32 1.442695, %v2644_v2 }
0x11bc   :  { %3915 = vpow2.f32 %v2647_v39 }
0x11bd   :  { %3917 = vpow2.f32 %v2645_v38 }
0x11c6   :  { %v3916_v40 = vpop.eup %3915 }
0x11c7   :  { %v2652_v41 = vsel %vm287_vm3, %v3916_v40, 0.0  ;;  %v3918_v23 = vpop.eup %3917 }
0x11c8   :  { %2653 = vadd.xlane.f32.xlu1 %v2652_v41  ;;  %v2649_v42 = vsel %vm287_vm3, %v3918_v23, 0.0 }
0x11cc   :  { %2650 = vadd.xlane.f32.xlu1 %v2649_v42 }
0x11dd   :  { %3843 = vrot.lane.b32.xlu1 %v4385_v29, %s4019_s21 }
0x11fe   :  { %v3540_v24 = vpop.f32.mrb[18].mxu0 }
0x11ff   :  { %v2452_v44 = vpop.f32.mrb[19].mxu0 }
0x1200   :  { %3543 = vmatprep.mubr.msk.f32.mxu0 %vm203_vm1, %v2452_v44 }
0x1201   :  { %3544 = vmatmul.mubr.msk.f32.vlgmr.msra.gmra.mrb[16].mxu0 %vm203_vm1, %v3540_v24  ;;  %v2874_v24 = vrot.slane %v4492_v58, %v1336_v17 }
0x1255   :  { %v2654_v47 = vpop.xlane.xlu1 %2653 }
0x1256   :  { %3919 = vrcp.f32 %v2654_v47 }
0x1259   :  { %v2651_v48 = vpop.xlane.xlu1 %2650 }
0x125a   :  { %3921 = vrcp.f32 %v2651_v48 }
0x125d   :  { %v3844_v49 = vpop.permute.xlu1 %3843 }
0x125e   :  { %v3846_v45 = vunpack.i.h.bf16 %v3844_v49  ;;  %v3845_v50 = vunpack.i.l.bf16 %v3844_v49 }
0x1260   :  { %v3711_v51 = vpack.c.bf16 %v3846_v45, %v3845_v50  ;;  %v3920_v29 = vpop.eup %3919 }
0x1261   :  { %v2658_v55 = vmul.f32 %v3920_v29, %v3916_v40  ;;  %v3216_v29 = vld [vmem:[%s4598_s6 + $0x1] ss:$0 sm:$0xff]  ;;  %s4020_s6 = smov [#allocation7]  }
0x1262   :  { %3712 = vmatprep.subr.bf16.mxu0 %v3711_v51 }
0x1263   :  { %3714 = vmatpush3.bf16.msra.mxu0 %v3711_v51 }
0x1264   :  { %v3922_v54 = vpop.eup %3921  ;;  %3560 = vmatprep.subr.mxu0 %v3209_v52 }
0x1265   :  { %v2657_v43 = vmul.f32 %v3922_v54, %v3918_v23  ;;  %v2868_v23 = vrot.slane %v4492_v58, %v103_v30  ;;  %v3225_v30 = vld [vmem:[%s4599_s7 + $0x70] sm:$0xff] }
0x1267   :  { %3557 = vmatprep.mubr.msk.f32.mxu0 %vm287_vm3, %v2657_v43 }
0x1268   :  { %3558 = vmatmul.mubr.msk.f32.vlgmr.msra.gmra.mrb[20].mxu0 %vm287_vm3, %v2658_v55 }
0x1269   :  { %3561 = vmatpush3.msra.mxu0 %v3209_v52  ;;  %v3226_v52 = vld [vmem:[%s4599_s7 + $0x78] sm:$0xff]  ;;  %s3113_s7 = sshll.u32 %s4020_s6, 4  ;;  %s3114_s7 = int_to_ptr.vmem [resolvable:$true] %s3113_s7 }
0x126a   :  { %3724 = vmatprep.subr.bf16.mxu0 %v3723_v33  ;;  %v3735_v17 = vpack.c.bf16 %v3226_v52, %v3225_v30  ;;  %s3977_s8 = scalar_lea.vmem %s3114_s7, 256  ;;  %p3982_p3 = scmp.lt.s32.totalorder %s3114_s7, %s3114_s7 }
0x126b   :  { %p3978_p2 = scmp.ne.s32.totalorder %s3114_s7, %s3977_s8  ;;  %p3983_p4 = scmp.lt.s32.totalorder %s3977_s8, %s3977_s8 }
0x126d   :  { %p3984_p5 = por %p3983_p4, %p3982_p3 }
0x126f   :  { %p3985_p6 = pnand %p3984_p5, %p3978_p2 }
0x133b   :  { %v3559_v56 = vpop.f32.mrb[20].mxu0 }
0x133c   :  { %v2737_v57 = vpop.f32.mrb[21].mxu0 }
0x133d   :  { %3562 = vmatprep.mubr.msk.f32.mxu0 %vm203_vm1, %v2737_v57 }
0x133e   :  { %3563 = vmatmul.mubr.msk.f32.vlgmr.msra.gmra.mrb[16].mxu0 %vm203_vm1, %v3559_v56 }
0x133f   :  { %3726 = vmatpush3.bf16.msra.mxu0 %v3723_v33 }
0x1340   :  { %3728 = vmatprep.subr.bf16.mxu0 %v3727_v1 }
0x1343   :  { %3730 = vmatpush3.bf16.msra.mxu0 %v3727_v1 }
0x1344   :  { %3732 = vmatprep.subr.bf16.mxu0 %v3731_v36 }
0x1347   :  { %3734 = vmatpush3.bf16.msra.mxu0 %v3731_v36 }
0x1348   :  { %3736 = vmatprep.subr.bf16.mxu0 %v3735_v17 }
0x134b   :  { %3738 = vmatpush3.bf16.msra.mxu0 %v3735_v17 }
0x1411   :  { %v3564_v60 = vpop.f32.mrb[16].mxu0 }
0x1412   :  { %v2832_v61 = vadd.f32 %v3564_v60, %v4346_v35  ;;  %v2820_v53 = vpop.f32.mrb[17].mxu0 }
0x1413   :  { %v2831_v4 = vadd.f32 %v2820_v53, %v4344_v0 }
0x1414   :  { %v4499_v5 = vadd.f32 %v2836_v59, %v2832_v61  ;;  %v3065_v61 = vrot.slane %v4492_v58, %v1368_v62 }
0x1415   :  { %v4501_v6 = vadd.f32 %v2836_v59, %v2831_v4 }
0x1416   :  { %v2842_v7 = vsel %vm67_vm0, %v4499_v5, 0.0 }
0x1417   :  { %2843 = vadd.xlane.f32.xlu1 %v2842_v7  ;;  %v2839_v8 = vsel %vm67_vm0, %v4501_v6, 0.0 }
0x1418   :  { %2840 = vadd.xlane.f32.xlu0 %v2839_v8 }
0x14a4   :  { %v2844_v9 = vpop.xlane.xlu1 %2843 }
0x14a5   :  { %v2846_v28 = vmul.f32 0.03125, %v2844_v9  ;;  %v2841_v10 = vpop.xlane.xlu0 %2840 }
0x14a6   :  { %v2845_v11 = vmul.f32 0.03125, %v2841_v10 }
0x14a7   :  { %v2848_v35 = vsub.f32 %v4499_v5, %v2846_v28 }
0x14a8   :  { %v2847_v0 = vsub.f32 %v4501_v6, %v2845_v11 }
0x14a9   :  { %v2850_v13 = vmul.f32 %v2848_v35, %v2848_v35 }
0x14aa   :  { %v2849_v46 = vmul.f32 %v2847_v0, %v2847_v0 }
0x14ab   :  { %v2854_v14 = vsel %vm67_vm0, %v2850_v13, 0.0 }
0x14ac   :  { %v2851_v12 = vsel %vm67_vm0, %v2849_v46, 0.0 }
0x14ad   :  { %2852 = vadd.xlane.f32.xlu0 %v2851_v12 }
0x14b1   :  { %2855 = vadd.xlane.f32.xlu0 %v2854_v14 }
0x153a   :  { %v2853_v37 = vpop.xlane.xlu0 %2852 }
0x153b   :  { %v2857_v2 = vmul.f32 0.03125, %v2853_v37 }
0x153d   :  { %v2859_v38 = vadd.f32 1e-05, %v2857_v2 }
0x153e   :  { %v2856_v39 = vpop.xlane.xlu0 %2855 }
0x153f   :  { %3923 = vrsqrt.f32 %v2859_v38  ;;  %v2858_v40 = vmul.f32 0.03125, %v2856_v39 }
0x1541   :  { %v2860_v41 = vadd.f32 1e-05, %v2858_v40 }
0x1543   :  { %3925 = vrsqrt.f32 %v2860_v41 }
0x1549   :  { %v3924_v42 = vpop.eup %3923 }
0x154a   :  { %v2863_v44 = vmul.f32 %v3924_v42, %v2847_v0 }
0x154c   :  { %v2869_v47 = vmul.f32 %v2868_v23, %v2863_v44 }
0x154d   :  { %v3926_v48 = vpop.eup %3925 }
0x154e   :  { %v2864_v49 = vmul.f32 %v3926_v48, %v2848_v35  ;;  %v2875_v45 = vadd.f32 %v2874_v24, %v2869_v47 }
0x1550   :  { %3573 = vmatprep.mubr.msk.f32.mxu1 %vm67_vm0, %v2875_v45  ;;  %v2870_v50 = vmul.f32 %v2868_v23, %v2864_v49 }
0x1552   :  { %v2876_v51 = vadd.f32 %v2874_v24, %v2870_v50 }
0x1554   :  { %3574 = vmatmul.mubr.msk.f32.vlgmr.msra.gmra.mrb[22].mxu1 %vm67_vm0, %v2876_v51 }
0x1627   :  { %v3575_v54 = vpop.f32.mrb[22].mxu1 }
0x1628   :  { %v2965_v43 = vadd.f32 %v3575_v54, %v3216_v29  ;;  %v2959_v55 = vpop.f32.mrb[23].mxu1 }
0x1629   :  { %v2960_v56 = vadd.f32 %v3216_v29, %v2959_v55 }
0x162a   :  { %v2969_v59 = vmax.f32 %v2965_v43, 0.0 }
0x162b   :  { %v2968_v57 = vmax.f32 %v2960_v56, 0.0 }
0x162d   :  { %3592 = vmatprep.mubr.msk.f32.mxu0 %vm1478_vm4, %v2968_v57 }
0x162e   :  { %3593 = vmatmul.mubr.msk.f32.vlgmr.msra.gmra.mrb[22].mxu0 %vm1478_vm4, %v2969_v59 }
0x1701   :  { %v3594_v60 = vpop.f32.mrb[22].mxu0 }
0x1702   :  { %v3051_v53 = vpop.f32.mrb[23].mxu0  ;;  %v3061_v4 = vadd.f32 %v3594_v60, %v4499_v5 }
0x1703   :  { %v3060_v7 = vadd.f32 %v3051_v53, %v4501_v6 }
0x1704   :  { %v3067_v28 = vadd.f32 %v3065_v61, %v3061_v4 }
0x1705   :  { %v3066_v8 = vadd.f32 %v3065_v61, %v3060_v7 }
0x1706   :  { %v3071_v10 = vsel %vm67_vm0, %v3067_v28, 0.0 }
0x1707   :  { %v3068_v9 = vsel %vm67_vm0, %v3066_v8, 0.0 }
0x1708   :  { %3069 = vadd.xlane.f32.xlu0 %v3068_v9 }
0x170c   :  { %3072 = vadd.xlane.f32.xlu0 %v3071_v10 }
0x1795   :  { %v3070_v11 = vpop.xlane.xlu0 %3069 }
0x1796   :  { %v3074_v35 = vmul.f32 0.03125, %v3070_v11 }
0x1798   :  { %v3076_v0 = vsub.f32 %v3066_v8, %v3074_v35 }
0x1799   :  { %v3073_v46 = vpop.xlane.xlu0 %3072 }
0x179a   :  { %v3075_v12 = vmul.f32 0.03125, %v3073_v46  ;;  %v3078_v13 = vmul.f32 %v3076_v0, %v3076_v0 }
0x179c   :  { %v3077_v62 = vsub.f32 %v3067_v28, %v3075_v12  ;;  %v3080_v14 = vsel %vm67_vm0, %v3078_v13, 0.0 }
0x179d   :  { %3081 = vadd.xlane.f32.xlu0 %v3080_v14 }
0x179e   :  { %v3079_v5 = vmul.f32 %v3077_v62, %v3077_v62 }
0x17a0   :  { %v3083_v6 = vsel %vm67_vm0, %v3079_v5, 0.0 }
0x17a1   :  { %3084 = vadd.xlane.f32.xlu1 %v3083_v6 }
0x182a   :  { %v3082_v16 = vpop.xlane.xlu0 %3081 }
0x182b   :  { %v3086_v19 = vmul.f32 0.03125, %v3082_v16 }
0x182d   :  { %v3088_v20 = vadd.f32 1e-05, %v3086_v19 }
0x182e   :  { %v3085_v21 = vpop.xlane.xlu1 %3084 }
0x182f   :  { %3927 = vrsqrt.f32 %v3088_v20  ;;  %v3087_v22 = vmul.f32 0.03125, %v3085_v21 }
0x1831   :  { %v3089_v25 = vadd.f32 1e-05, %v3087_v22 }
0x1833   :  { %3929 = vrsqrt.f32 %v3089_v25 }
0x1839   :  { %v3928_v32 = vpop.eup %3927 }
0x183a   :  { %v3092_v33 = vmul.f32 %v3928_v32, %v3076_v0 }
0x183c   :  { %v3098_v34 = vmul.f32 %v3097_v31, %v3092_v33 }
0x183d   :  { %v3930_v1 = vpop.eup %3929 }
0x183e   :  { %v3093_v15 = vmul.f32 %v3930_v1, %v3077_v62  ;;  %v3104_v3 = vadd.f32 %v3103_v18, %v3098_v34 }
0x1840   :  { %v3099_v36 = vmul.f32 %v3097_v31, %v3093_v15  ;;  %3106 = vst.msk [vmem:[#allocation7] sm:$0xff] %vm67_vm0, %v3104_v3 }
0x1842   :  { %v3105_v37 = vadd.f32 %v3103_v18, %v3099_v36 }
0x1844   :  { %3107 = vst.msk [vmem:[#allocation7 + $0x8] sm:$0xff] %vm67_vm0, %v3105_v37 }
0x1845   :  { %3988 = shalt.err (!%p3985_p6)
}
0x1846   :  { %s3989_s21 = scalar_lea.hbm %s4601_s9, 256 }
0x1847   :  { %p3990_p7 = scmp.ne.s32.totalorder %s4601_s9, %s3989_s21  ;;  %p3993_p8 = scmp.lt.u32.totalorder %s3989_s21, %s4601_s9 }
0x1849   :  { %p3995_p9 = pnand %p3993_p8, %p3990_p7 }
0x184b   :  { %3998 = shalt.err (!%p3995_p9)
}
0x184c   :  { %3119 = dma.vmem_to_hbm [thread:$0]  %s3114_s7, 256, %s4601_s9, [#allocation4], %s4006_s19, %s4006_s19, %s4007_s20  }
0x184d   :  { %4003 = dma.done.wait [#allocation4], 256  }
0x184e   :  { %4004 = vsyncadd [#allocation4], 4294967040 }
0x184f   :  { %3123 = vsyncpa [#allocation3], 1 }
0x1850   :  { %3124 = vsyncpa [#allocation6], 1 }
0x1851   :  { %3125 = vsyncpa [#allocation4], 1 }

</bundles_post_ra>
